<compile_context>
chip_gen: v7x
topology: tpu7x:2x2x1
jax: 0.10.0
libtpu: 0.0.40
codegen_flags: <defaults>
</compile_context>

<pallas_src>
import jax
import jax.numpy as jnp
import numpy as np
from jax.experimental import pallas as pl
from jax.experimental.pallas import tpu as pltpu


def _round_up(v: int, m: int) -> int:
    return (v + m - 1) // m * m


def gat_kernel(x_ref, w_ref, b_ref, row_sub_ref, col_sub_ref, row_lane_ref,
               out_ref, h_sc, m_sc, l_sc, acc_sc):
    t = pl.program_id(0)
    n_p = acc_sc.shape[0]          # padded node count (multiple of 128)
    e_t = row_sub_ref.shape[0]     # edges per tile (multiple of 128)

    # ---- first E tile: project node features once, zero online-softmax state ----
    @pl.when(t == 0)
    def _init():
        h_sc[...] = (jnp.dot(x_ref[...], w_ref[...],
                             preferred_element_type=jnp.float32) + b_ref[...])
        m_sc[...] = jnp.full_like(m_sc, -jnp.inf)   # running per-node max
        l_sc[...] = jnp.zeros_like(l_sc)            # running per-node sum
        acc_sc[...] = jnp.zeros_like(acc_sc)        # running per-node numerator

    h = h_sc[...]                                   # (N_p, C_p)

    # ---- per-tile one-hot operands from int32 edge ids (no (E,N) HBM traffic) ----
    row_sub = row_sub_ref[...]                      # (E_t, 1)  edge source ids
    col_sub = col_sub_ref[...]                      # (E_t, 1)  edge target ids
    row_lane = row_lane_ref[...]                    # (1, E_t)  edge source ids (lane layout)
    iota_lane = jax.lax.broadcasted_iota(jnp.int32, (e_t, n_p), 1)
    iota_sub = jax.lax.broadcasted_iota(jnp.int32, (n_p, e_t), 0)
    r_en_b = iota_lane == row_sub                   # (E_t, N_p) bool (gather mask, row)
    r_en = r_en_b.astype(jnp.float32)
    c_en = (iota_lane == col_sub).astype(jnp.float32)   # (E_t, N_p) gather one-hot, col
    rt_ne = (iota_sub == row_lane).astype(jnp.float32)  # (N_p, E_t) scatter one-hot

    # ---- gathers x_i = h[row], x_j = h[col] as MXU matmuls (contract over N_p=128k) ----
    x_i = jnp.dot(r_en, h, preferred_element_type=jnp.float32)   # (E_t, C_p)
    x_j = jnp.dot(c_en, h, preferred_element_type=jnp.float32)   # (E_t, C_p)

    # ---- attention logits + leaky_relu(0.2) ----
    e = jnp.sum(x_i * x_j, axis=1, keepdims=True)   # (E_t, 1)
    e = jnp.where(e > 0, e, 0.2 * e)

    # ---- online (flash-style) segment softmax over edge source index ----
    neg_inf = jnp.float32(-jnp.inf)
    masked = jnp.where(r_en_b, e, neg_inf)                   # (E_t, N_p)
    tile_max = jnp.max(masked, axis=0, keepdims=True)        # (1, N_p) per-node tile max
    m_old = m_sc[...]
    m_new = jnp.maximum(m_old, tile_max)
    m_safe = jnp.where(m_new == neg_inf, 0.0, m_new)         # nodes with no edges yet
    corr = jnp.exp(m_old - m_safe)                           # (1, N_p), 0 for fresh nodes
    m_edge = jnp.sum(r_en * m_safe, axis=1, keepdims=True)   # (E_t, 1) = m_safe[row]
    pe = jnp.exp(e - m_edge)                                 # (E_t, 1), <= 1 for real edges
    l_add = jnp.sum(r_en * pe, axis=0, keepdims=True)        # (1, N_p) partial denominators
    l_sc[...] = corr * l_sc[...] + l_add
    m_sc[...] = m_new

    # per-node rescale of the accumulator expressed as diag(corr) @ acc (layout-natural,
    # stays on the MXU; avoids any (1,N)->(N,1) relayout of the running-max state)
    eye = (jax.lax.broadcasted_iota(jnp.int32, (n_p, n_p), 0)
           == jax.lax.broadcasted_iota(jnp.int32, (n_p, n_p), 1))
    d_corr = jnp.where(eye, corr, 0.0)                                      # (N_p, N_p)
    contrib = jnp.dot(rt_ne, x_j * pe, preferred_element_type=jnp.float32)  # (N_p, C_p)
    acc_sc[...] = (jnp.dot(d_corr, acc_sc[...], preferred_element_type=jnp.float32)
                   + contrib)

    # dropout(p=0.6) in eval mode is identity.

    # ---- finalize on the last E tile: normalize by the softmax denominator ----
    @pl.when(t == pl.num_programs(0) - 1)
    def _fin():
        inv_l = pl.reciprocal(l_sc[...] + 1e-16, approx=False)   # (1, N_p), exact
        d_inv = jnp.where(eye, inv_l, 0.0)
        out_ref[...] = jnp.dot(d_inv, acc_sc[...],
                               preferred_element_type=jnp.float32)


def gat_conv(x, w, b, row, col, num_nodes, *, e_tile=128):
    """x: (N, Cin) f32; w: (Cin, Cout); b: (1, Cout); row/col: (E,) int32."""
    n = int(num_nodes)
    cin = int(x.shape[1])
    cout = int(w.shape[1])
    e = int(row.shape[0])

    n_p = _round_up(max(n, 1), 128)
    cin_p = _round_up(cin, 128)
    cout_p = _round_up(cout, 128)
    e_p = _round_up(max(e, 1), e_tile)
    n_tiles = e_p // e_tile

    # pad to lane-dense / full-MXU shapes (zeros are exact no-ops in the matmuls)
    x_p = jnp.zeros((n_p, cin_p), jnp.float32).at[:n, :cin].set(x.astype(jnp.float32))
    w_p = jnp.zeros((cin_p, cout_p), jnp.float32).at[:cin, :cout].set(w.astype(jnp.float32))
    b_p = jnp.zeros((1, cout_p), jnp.float32).at[:, :cout].set(
        jnp.reshape(b, (1, cout)).astype(jnp.float32))

    sentinel = jnp.int32(n_p)  # never matches a node id in [0, n_p) -> padded edges vanish
    row_pad = jnp.full((e_p,), sentinel, jnp.int32).at[:e].set(row.astype(jnp.int32))
    col_pad = jnp.full((e_p,), sentinel, jnp.int32).at[:e].set(col.astype(jnp.int32))
    row_sub = row_pad.reshape(e_p, 1)   # edge ids on sublanes (gather one-hots)
    col_sub = col_pad.reshape(e_p, 1)
    row_lane = row_pad.reshape(1, e_p)  # edge ids on lanes (scatter one-hot / mask)

    flops = int(2 * n_p * cin_p * cout_p
                + n_tiles * (4 * e_tile * n_p * cout_p      # gathers
                             + 2 * n_p * e_tile * cout_p    # scatter
                             + 2 * n_p * n_p * cout_p       # diag rescale
                             + 8 * e_tile * n_p))           # softmax bookkeeping
    cost = pl.CostEstimate(
        flops=flops,
        transcendentals=int(n_tiles * (e_tile + 2 * n_p)),
        bytes_accessed=int(4 * (n_p * cin_p + cin_p * cout_p + cout_p
                                + 3 * e_p + n_p * cout_p)))

    out_p = pl.pallas_call(
        gat_kernel,
        out_shape=jax.ShapeDtypeStruct((n_p, cout_p), jnp.float32),
        grid_spec=pltpu.PrefetchScalarGridSpec(
            num_scalar_prefetch=0,
            grid=(n_tiles,),
            in_specs=[
                pl.BlockSpec((n_p, cin_p), lambda t: (0, 0)),      # x (resident)
                pl.BlockSpec((cin_p, cout_p), lambda t: (0, 0)),   # w (resident)
                pl.BlockSpec((1, cout_p), lambda t: (0, 0)),       # b (resident)
                pl.BlockSpec((e_tile, 1), lambda t: (t, 0)),       # row ids (sublane)
                pl.BlockSpec((e_tile, 1), lambda t: (t, 0)),       # col ids (sublane)
                pl.BlockSpec((1, e_tile), lambda t: (0, t)),       # row ids (lane)
            ],
            out_specs=pl.BlockSpec((n_p, cout_p), lambda t: (0, 0)),
            scratch_shapes=[
                pltpu.VMEM((n_p, cout_p), jnp.float32),   # h = lin(x)
                pltpu.VMEM((1, n_p), jnp.float32),        # running per-node max
                pltpu.VMEM((1, n_p), jnp.float32),        # running per-node sum
                pltpu.VMEM((n_p, cout_p), jnp.float32),   # per-node numerator accumulator
            ]),
        compiler_params=pltpu.CompilerParams(
            dimension_semantics=("arbitrary",),
            vmem_limit_bytes=32 * 1024 * 1024),
        cost_estimate=cost,
    )(x_p, w_p, b_p, row_sub, col_sub, row_lane)

    return out_p[:n, :cout]


if __name__ == "__main__":
    key = jax.random.PRNGKey(0)
    N, Cin, Cout, E0 = 16, 8, 32, 300
    k1, k2, k3, k4, k5, k6, k7 = jax.random.split(key, 7)

    x = jax.random.normal(k1, (N, Cin), dtype=jnp.float32)

    # edge_index (2, E0): random directed edges
    row0 = np.asarray(jax.random.randint(k2, (E0,), 0, N))
    col0 = np.asarray(jax.random.randint(k3, (E0,), 0, N))

    # remove_self_loops + add_self_loops (intended GATConv semantics)
    keep = row0 != col0
    row = jnp.asarray(np.concatenate([row0[keep], np.arange(N)]), dtype=jnp.int32)
    col = jnp.asarray(np.concatenate([col0[keep], np.arange(N)]), dtype=jnp.int32)

    # deterministic nn.Linear-style init: U(-1/sqrt(fan_in), 1/sqrt(fan_in))
    klin = 1.0 / np.sqrt(Cin)
    w = jax.random.uniform(k4, (Cin, Cout), jnp.float32, -klin, klin)   # lin.weight^T
    b = jax.random.uniform(k5, (1, Cout), jnp.float32, -klin, klin)     # lin.bias
    katt = 1.0 / np.sqrt(2 * Cout)
    att_w = jax.random.uniform(k6, (2 * Cout, 1), jnp.float32, -katt, katt)  # unused by forward
    att_b = jax.random.uniform(k7, (1,), jnp.float32, -katt, katt)           # unused by forward
    del att_w, att_b

    out = jax.block_until_ready(gat_conv(x, w, b, row, col, N))

    # pure-JAX reference (segment ops) to validate the kernel
    h = x @ w + b
    x_i, x_j = h[row], h[col]
    e = jnp.sum(x_i * x_j, axis=-1)
    e = jnp.where(e > 0, e, 0.2 * e)
    m = jax.ops.segment_max(e, row, num_segments=N)
    m = jnp.where(jnp.isfinite(m), m, 0.0)
    num = jnp.exp(e - m[row])
    den = jax.ops.segment_sum(num, row, num_segments=N)
    alpha = num / (den[row] + 1e-16)
    ref = jax.ops.segment_sum(x_j * alpha[:, None], row, num_segments=N)

    assert out.shape == (N, Cout) and out.dtype == jnp.float32
    assert bool(jnp.all(jnp.isfinite(out)))
    err = float(jnp.max(jnp.abs(out - ref)))
    assert jnp.allclose(out, ref, atol=2e-4, rtol=2e-4), f"mismatch vs reference: {err}"
    print("KERNEL_OK")
</pallas_src>

<mosaic_0001>
module attributes {stable_mosaic.version = 11 : i64} {
  func.func @gat_kernel(%arg0: i32, %arg1: memref<128x128xf32, #tpu.memory_space<vmem>>, %arg2: memref<128x128xf32, #tpu.memory_space<vmem>>, %arg3: memref<1x128xf32, #tpu.memory_space<vmem>>, %arg4: memref<128x1xi32, #tpu.memory_space<vmem>>, %arg5: memref<128x1xi32, #tpu.memory_space<vmem>>, %arg6: memref<1x128xi32, #tpu.memory_space<vmem>>, %arg7: memref<128x128xf32, #tpu.memory_space<vmem>>, %arg8: memref<128x128xf32, #tpu.memory_space<vmem>>, %arg9: memref<1x128xf32, #tpu.memory_space<vmem>>, %arg10: memref<1x128xf32, #tpu.memory_space<vmem>>, %arg11: memref<128x128xf32, #tpu.memory_space<vmem>>) attributes {dimension_semantics = [#tpu.dimension_semantics<arbitrary>], iteration_bounds = array<i64: 3>, scalar_prefetch = 0 : i64, scratch_operands = 4 : i64, tpu.core_type = #tpu.core_type<tc>, window_params = [{pipeline_mode = #tpu.pipeline_mode<synchronous>, transform_indices = @transform_0, window_bounds = array<i64: 128, 128>}, {pipeline_mode = #tpu.pipeline_mode<synchronous>, transform_indices = @transform_1, window_bounds = array<i64: 128, 128>}, {pipeline_mode = #tpu.pipeline_mode<synchronous>, transform_indices = @transform_2, window_bounds = array<i64: 1, 128>}, {transform_indices = @transform_3, window_bounds = array<i64: 128, 1>}, {transform_indices = @transform_4, window_bounds = array<i64: 128, 1>}, {transform_indices = @transform_5, window_bounds = array<i64: 1, 128>}, {pipeline_mode = #tpu.pipeline_mode<synchronous>, transform_indices = @transform_6, window_bounds = array<i64: 128, 128>}]} {
    %c0_i32 = arith.constant 0 : i32
    %0 = arith.cmpi eq, %arg0, %c0_i32 : i32
    %1 = arith.extui %0 : i1 to i32
    %c0_i32_0 = arith.constant 0 : i32
    %2 = arith.cmpi ne, %1, %c0_i32_0 : i32
    scf.if %2 {
      %c0_34 = arith.constant 0 : index
      %c0_35 = arith.constant 0 : index
      %77 = vector.load %arg1[%c0_34, %c0_35] : memref<128x128xf32, #tpu.memory_space<vmem>>, vector<128x128xf32>
      %c0_36 = arith.constant 0 : index
      %c0_37 = arith.constant 0 : index
      %78 = vector.load %arg2[%c0_36, %c0_37] : memref<128x128xf32, #tpu.memory_space<vmem>>, vector<128x128xf32>
      %cst_38 = arith.constant dense<0.000000e+00> : vector<128x128xf32>
      %79 = tpu.matmul %77, %78, %cst_38 {dimension_numbers = #tpu.dot_dimension_numbers<[1], [0], [0], [1], [0, 0, 1, 1], [], []>} : vector<128x128xf32>, vector<128x128xf32>, vector<128x128xf32> -> vector<128x128xf32>
      %c0_39 = arith.constant 0 : index
      %c0_40 = arith.constant 0 : index
      %80 = vector.load %arg3[%c0_39, %c0_40] : memref<1x128xf32, #tpu.memory_space<vmem>>, vector<1x128xf32>
      %81 = vector.broadcast %80 : vector<1x128xf32> to vector<128x128xf32>
      %82 = arith.addf %79, %81 : vector<128x128xf32>
      %c0_41 = arith.constant 0 : index
      %c0_42 = arith.constant 0 : index
      %83 = vector.load %arg8[%c0_41, %c0_42] : memref<128x128xf32, #tpu.memory_space<vmem>>, vector<128x128xf32>
      tpu.vector_store %arg8[%c0_41, %c0_42], %82 {strides = array<i32>} : memref<128x128xf32, #tpu.memory_space<vmem>>, vector<128x128xf32>,
      %cst_43 = arith.constant 0xFF800000 : f32
      %84 = vector.broadcast %cst_43 : f32 to vector<1x128xf32>
      %c0_44 = arith.constant 0 : index
      %c0_45 = arith.constant 0 : index
      %85 = vector.load %arg9[%c0_44, %c0_45] : memref<1x128xf32, #tpu.memory_space<vmem>>, vector<1x128xf32>
      tpu.vector_store %arg9[%c0_44, %c0_45], %84 {strides = array<i32>} : memref<1x128xf32, #tpu.memory_space<vmem>>, vector<1x128xf32>,
      %cst_46 = arith.constant 0.000000e+00 : f32
      %86 = vector.broadcast %cst_46 : f32 to vector<1x128xf32>
      %c0_47 = arith.constant 0 : index
      %c0_48 = arith.constant 0 : index
      %87 = vector.load %arg10[%c0_47, %c0_48] : memref<1x128xf32, #tpu.memory_space<vmem>>, vector<1x128xf32>
      tpu.vector_store %arg10[%c0_47, %c0_48], %86 {strides = array<i32>} : memref<1x128xf32, #tpu.memory_space<vmem>>, vector<1x128xf32>,
      %cst_49 = arith.constant 0.000000e+00 : f32
      %88 = vector.broadcast %cst_49 : f32 to vector<128x128xf32>
      %c0_50 = arith.constant 0 : index
      %c0_51 = arith.constant 0 : index
      %89 = vector.load %arg11[%c0_50, %c0_51] : memref<128x128xf32, #tpu.memory_space<vmem>>, vector<128x128xf32>
      tpu.vector_store %arg11[%c0_50, %c0_51], %88 {strides = array<i32>} : memref<128x128xf32, #tpu.memory_space<vmem>>, vector<128x128xf32>,
    } else {
    }
    %c0 = arith.constant 0 : index
    %c0_1 = arith.constant 0 : index
    %3 = vector.load %arg8[%c0, %c0_1] : memref<128x128xf32, #tpu.memory_space<vmem>>, vector<128x128xf32>
    %c0_2 = arith.constant 0 : index
    %c0_3 = arith.constant 0 : index
    %4 = vector.load %arg4[%c0_2, %c0_3] : memref<128x1xi32, #tpu.memory_space<vmem>>, vector<128x1xi32>
    %c0_4 = arith.constant 0 : index
    %c0_5 = arith.constant 0 : index
    %5 = vector.load %arg5[%c0_4, %c0_5] : memref<128x1xi32, #tpu.memory_space<vmem>>, vector<128x1xi32>
    %c0_6 = arith.constant 0 : index
    %c0_7 = arith.constant 0 : index
    %6 = vector.load %arg6[%c0_6, %c0_7] : memref<1x128xi32, #tpu.memory_space<vmem>>, vector<1x128xi32>
    %7 = tpu.iota {dimensions = array<i32: 1>} : vector<128x128xi32>
    %8 = tpu.iota {dimensions = array<i32: 0>} : vector<128x128xi32>
    %9 = vector.broadcast %4 : vector<128x1xi32> to vector<128x128xi32>
    %10 = arith.cmpi eq, %7, %9 : vector<128x128xi32>
    %11 = arith.extui %10 : vector<128x128xi1> to vector<128x128xi32>
    %12 = arith.sitofp %11 : vector<128x128xi32> to vector<128x128xf32>
    %13 = vector.broadcast %5 : vector<128x1xi32> to vector<128x128xi32>
    %14 = arith.cmpi eq, %7, %13 : vector<128x128xi32>
    %15 = arith.extui %14 : vector<128x128xi1> to vector<128x128xi32>
    %16 = arith.sitofp %15 : vector<128x128xi32> to vector<128x128xf32>
    %17 = vector.broadcast %6 : vector<1x128xi32> to vector<128x128xi32>
    %18 = arith.cmpi eq, %8, %17 : vector<128x128xi32>
    %19 = arith.extui %18 : vector<128x128xi1> to vector<128x128xi32>
    %20 = arith.sitofp %19 : vector<128x128xi32> to vector<128x128xf32>
    %cst = arith.constant dense<0.000000e+00> : vector<128x128xf32>
    %21 = tpu.matmul %12, %3, %cst {dimension_numbers = #tpu.dot_dimension_numbers<[1], [0], [0], [1], [0, 0, 1, 1], [], []>} : vector<128x128xf32>, vector<128x128xf32>, vector<128x128xf32> -> vector<128x128xf32>
    %cst_8 = arith.constant dense<0.000000e+00> : vector<128x128xf32>
    %22 = tpu.matmul %16, %3, %cst_8 {dimension_numbers = #tpu.dot_dimension_numbers<[1], [0], [0], [1], [0, 0, 1, 1], [], []>} : vector<128x128xf32>, vector<128x128xf32>, vector<128x128xf32> -> vector<128x128xf32>
    %23 = arith.mulf %21, %22 : vector<128x128xf32>
    %cst_9 = arith.constant dense<0.000000e+00> : vector<128xf32>
    %24 = vector.multi_reduction <add>, %23, %cst_9 [1] : vector<128x128xf32> to vector<128xf32>
    %25 = vector.shape_cast %24 : vector<128xf32> to vector<128x1xf32>
    %cst_10 = arith.constant 0.000000e+00 : f32
    %26 = vector.broadcast %cst_10 : f32 to vector<128x1xf32>
    %27 = arith.cmpf ogt, %25, %26 : vector<128x1xf32>
    %cst_11 = arith.constant 2.000000e-01 : f32
    %28 = vector.broadcast %cst_11 : f32 to vector<128x1xf32>
    %29 = arith.mulf %28, %25 : vector<128x1xf32>
    %30 = arith.select %27, %25, %29 : vector<128x1xi1>, vector<128x1xf32>
    %cst_12 = arith.constant 0xFF800000 : f32
    %31 = vector.shape_cast %30 : vector<128x1xf32> to vector<128x1xf32>
    %32 = vector.broadcast %31 : vector<128x1xf32> to vector<128x128xf32>
    %33 = vector.broadcast %cst_12 : f32 to vector<128x128xf32>
    %34 = arith.select %10, %32, %33 : vector<128x128xi1>, vector<128x128xf32>
    %cst_13 = arith.constant dense<0xFF800000> : vector<128xf32>
    %35 = vector.multi_reduction <maximumf>, %34, %cst_13 [0] : vector<128x128xf32> to vector<128xf32>
    %36 = vector.shape_cast %35 : vector<128xf32> to vector<1x128xf32>
    %c0_14 = arith.constant 0 : index
    %c0_15 = arith.constant 0 : index
    %37 = vector.load %arg9[%c0_14, %c0_15] : memref<1x128xf32, #tpu.memory_space<vmem>>, vector<1x128xf32>
    %38 = arith.maximumf %37, %36 : vector<1x128xf32>
    %cst_16 = arith.constant 0xFF800000 : f32
    %39 = vector.broadcast %cst_16 : f32 to vector<1x128xf32>
    %40 = arith.cmpf oeq, %38, %39 : vector<1x128xf32>
    %cst_17 = arith.constant 0.000000e+00 : f32
    %41 = vector.broadcast %cst_17 : f32 to vector<1x128xf32>
    %42 = arith.select %40, %41, %38 : vector<1x128xi1>, vector<1x128xf32>
    %43 = arith.subf %37, %42 : vector<1x128xf32>
    %44 = math.exp %43 : vector<1x128xf32>
    %45 = vector.broadcast %42 : vector<1x128xf32> to vector<128x128xf32>
    %46 = arith.mulf %12, %45 : vector<128x128xf32>
    %cst_18 = arith.constant dense<0.000000e+00> : vector<128xf32>
    %47 = vector.multi_reduction <add>, %46, %cst_18 [1] : vector<128x128xf32> to vector<128xf32>
    %48 = vector.shape_cast %47 : vector<128xf32> to vector<128x1xf32>
    %49 = arith.subf %30, %48 : vector<128x1xf32>
    %50 = math.exp %49 : vector<128x1xf32>
    %51 = vector.broadcast %50 : vector<128x1xf32> to vector<128x128xf32>
    %52 = arith.mulf %12, %51 : vector<128x128xf32>
    %cst_19 = arith.constant dense<0.000000e+00> : vector<128xf32>
    %53 = vector.multi_reduction <add>, %52, %cst_19 [0] : vector<128x128xf32> to vector<128xf32>
    %54 = vector.shape_cast %53 : vector<128xf32> to vector<1x128xf32>
    %c0_20 = arith.constant 0 : index
    %c0_21 = arith.constant 0 : index
    %55 = vector.load %arg10[%c0_20, %c0_21] : memref<1x128xf32, #tpu.memory_space<vmem>>, vector<1x128xf32>
    %56 = arith.mulf %44, %55 : vector<1x128xf32>
    %57 = arith.addf %56, %54 : vector<1x128xf32>
    %c0_22 = arith.constant 0 : index
    %c0_23 = arith.constant 0 : index
    %58 = vector.load %arg10[%c0_22, %c0_23] : memref<1x128xf32, #tpu.memory_space<vmem>>, vector<1x128xf32>
    tpu.vector_store %arg10[%c0_22, %c0_23], %57 {strides = array<i32>} : memref<1x128xf32, #tpu.memory_space<vmem>>, vector<1x128xf32>,
    %c0_24 = arith.constant 0 : index
    %c0_25 = arith.constant 0 : index
    %59 = vector.load %arg9[%c0_24, %c0_25] : memref<1x128xf32, #tpu.memory_space<vmem>>, vector<1x128xf32>
    tpu.vector_store %arg9[%c0_24, %c0_25], %38 {strides = array<i32>} : memref<1x128xf32, #tpu.memory_space<vmem>>, vector<1x128xf32>,
    %60 = tpu.iota {dimensions = array<i32: 0>} : vector<128x128xi32>
    %61 = tpu.iota {dimensions = array<i32: 1>} : vector<128x128xi32>
    %62 = arith.cmpi eq, %60, %61 : vector<128x128xi32>
    %cst_26 = arith.constant 0.000000e+00 : f32
    %63 = vector.shape_cast %44 : vector<1x128xf32> to vector<1x128xf32>
    %64 = vector.broadcast %63 : vector<1x128xf32> to vector<128x128xf32>
    %65 = vector.broadcast %cst_26 : f32 to vector<128x128xf32>
    %66 = arith.select %62, %64, %65 : vector<128x128xi1>, vector<128x128xf32>
    %67 = vector.broadcast %50 : vector<128x1xf32> to vector<128x128xf32>
    %68 = arith.mulf %22, %67 : vector<128x128xf32>
    %cst_27 = arith.constant dense<0.000000e+00> : vector<128x128xf32>
    %69 = tpu.matmul %20, %68, %cst_27 {dimension_numbers = #tpu.dot_dimension_numbers<[1], [0], [0], [1], [0, 0, 1, 1], [], []>} : vector<128x128xf32>, vector<128x128xf32>, vector<128x128xf32> -> vector<128x128xf32>
    %c0_28 = arith.constant 0 : index
    %c0_29 = arith.constant 0 : index
    %70 = vector.load %arg11[%c0_28, %c0_29] : memref<128x128xf32, #tpu.memory_space<vmem>>, vector<128x128xf32>
    %cst_30 = arith.constant dense<0.000000e+00> : vector<128x128xf32>
    %71 = tpu.matmul %66, %70, %cst_30 {dimension_numbers = #tpu.dot_dimension_numbers<[1], [0], [0], [1], [0, 0, 1, 1], [], []>} : vector<128x128xf32>, vector<128x128xf32>, vector<128x128xf32> -> vector<128x128xf32>
    %72 = arith.addf %71, %69 : vector<128x128xf32>
    %c0_31 = arith.constant 0 : index
    %c0_32 = arith.constant 0 : index
    %73 = vector.load %arg11[%c0_31, %c0_32] : memref<128x128xf32, #tpu.memory_space<vmem>>, vector<128x128xf32>
    tpu.vector_store %arg11[%c0_31, %c0_32], %72 {strides = array<i32>} : memref<128x128xf32, #tpu.memory_space<vmem>>, vector<128x128xf32>,
    %c2_i32 = arith.constant 2 : i32
    %74 = arith.cmpi eq, %arg0, %c2_i32 : i32
    %75 = arith.extui %74 : i1 to i32
    %c0_i32_33 = arith.constant 0 : i32
    %76 = arith.cmpi ne, %75, %c0_i32_33 : i32
    scf.if %76 {
      %c0_34 = arith.constant 0 : index
      %c0_35 = arith.constant 0 : index
      %77 = vector.load %arg10[%c0_34, %c0_35] : memref<1x128xf32, #tpu.memory_space<vmem>>, vector<1x128xf32>
      %cst_36 = arith.constant 1.000000e-16 : f32
      %78 = vector.broadcast %cst_36 : f32 to vector<1x128xf32>
      %79 = arith.addf %77, %78 : vector<1x128xf32>
      %80 = tpu.reciprocal %79 : vector<1x128xf32> -> vector<1x128xf32>
      %cst_37 = arith.constant 0.000000e+00 : f32
      %81 = vector.shape_cast %80 : vector<1x128xf32> to vector<1x128xf32>
      %82 = vector.broadcast %81 : vector<1x128xf32> to vector<128x128xf32>
      %83 = vector.broadcast %cst_37 : f32 to vector<128x128xf32>
      %84 = arith.select %62, %82, %83 : vector<128x128xi1>, vector<128x128xf32>
      %c0_38 = arith.constant 0 : index
      %c0_39 = arith.constant 0 : index
      %85 = vector.load %arg11[%c0_38, %c0_39] : memref<128x128xf32, #tpu.memory_space<vmem>>, vector<128x128xf32>
      %cst_40 = arith.constant dense<0.000000e+00> : vector<128x128xf32>
      %86 = tpu.matmul %84, %85, %cst_40 {dimension_numbers = #tpu.dot_dimension_numbers<[1], [0], [0], [1], [0, 0, 1, 1], [], []>} : vector<128x128xf32>, vector<128x128xf32>, vector<128x128xf32> -> vector<128x128xf32>
      %c0_41 = arith.constant 0 : index
      %c0_42 = arith.constant 0 : index
      %87 = vector.load %arg7[%c0_41, %c0_42] : memref<128x128xf32, #tpu.memory_space<vmem>>, vector<128x128xf32>
      tpu.vector_store %arg7[%c0_41, %c0_42], %86 {strides = array<i32>} : memref<128x128xf32, #tpu.memory_space<vmem>>, vector<128x128xf32>,
    } else {
    }
    return
  }
  func.func @transform_0(%arg0: i32) -> (i32, i32) {
    %c0_i32 = arith.constant 0 : i32
    %c0_i32_0 = arith.constant 0 : i32
    %c0_i32_1 = arith.constant 0 : i32
    return %c0_i32, %c0_i32_0 : i32, i32
  }
  func.func @transform_1(%arg0: i32) -> (i32, i32) {
    %c0_i32 = arith.constant 0 : i32
    %c0_i32_0 = arith.constant 0 : i32
    %c0_i32_1 = arith.constant 0 : i32
    return %c0_i32, %c0_i32_0 : i32, i32
  }
  func.func @transform_2(%arg0: i32) -> (i32, i32) {
    %c0_i32 = arith.constant 0 : i32
    %c0_i32_0 = arith.constant 0 : i32
    %c0_i32_1 = arith.constant 0 : i32
    return %c0_i32, %c0_i32_0 : i32, i32
  }
  func.func @transform_3(%arg0: i32) -> (i32, i32) {
    %c0_i32 = arith.constant 0 : i32
    %c0_i32_0 = arith.constant 0 : i32
    return %arg0, %c0_i32 : i32, i32
  }
  func.func @transform_4(%arg0: i32) -> (i32, i32) {
    %c0_i32 = arith.constant 0 : i32
    %c0_i32_0 = arith.constant 0 : i32
    return %arg0, %c0_i32 : i32, i32
  }
  func.func @transform_5(%arg0: i32) -> (i32, i32) {
    %c0_i32 = arith.constant 0 : i32
    %c0_i32_0 = arith.constant 0 : i32
    return %c0_i32, %arg0 : i32, i32
  }
  func.func @transform_6(%arg0: i32) -> (i32, i32) {
    %c0_i32 = arith.constant 0 : i32
    %c0_i32_0 = arith.constant 0 : i32
    %c0_i32_1 = arith.constant 0 : i32
    return %c0_i32, %c0_i32_0 : i32, i32
  }
}

</mosaic_0001>

<bundles_post_ra>
// kernel: tpu_custom_call.1
= control target key start
LH: loop header
LB: loop body
LE: loop exit
PB: predicated region body
PF: predicated region fallthrough
CT: control target
= control target key end

     0   :  { %11 = vsyncpa [#allocation7], 0  ;;  %s3088_s21 = smov 0   ;;  %s4034_s0 = inlined_call_operand.vmem [shape: f32[128,128], index: 0, kind: input, shape index: {}]   ;;  %s4035_s1 = inlined_call_operand.vmem [shape: f32[128,128], index: 1, kind: input, shape index: {}]   ;;  %s4036_s2 = inlined_call_operand.vmem [shape: f32[1,128], index: 2, kind: input, shape index: {}]   ;;  %s4037_s3 = inlined_call_operand.vmem [shape: s32[384,1], index: 3, kind: input, shape index: {}]   ;;  %s4038_s4 = inlined_call_operand.vmem [shape: s32[384,1], index: 4, kind: input, shape index: {}]   ;;  %s4039_s5 = inlined_call_operand.vmem [shape: s32[1,384], index: 5, kind: input, shape index: {}]   ;;  %s4040_s6 = inlined_call_operand.hbm [shape: f32[128,128], index: 6, kind: output, shape index: {}]  }
   0x1 LB: > { %s3094_s22 = sadd.s32 4294967295, %s3043_s21   ;;  %p2038_p0 = scmp.ge.s32.totalorder %s3043_s21, 1  ;;  %s3043_s21 = sphi %s3088_s21, %s17_s21  }
   0x2   : > { %p228_p1 = scmp.lt.s32.totalorder %s3043_s21, 4 }
   0x4   : > { %p229_p2 = pnand %p2038_p0, %p228_p1 }
   0x6   : > { %232 = sbr.rel (%p229_p2) target bundleno = 1600 (0x640), region = 44 }
   0xd   : > { %s2039_s23 = sshll.u32 %s3094_s22, 4  ;;  %p273_p3 = scmp.lt.s32.totalorder %s3094_s22, 2 }
   0xe   : > { %p262_p4 = scmp.lt.s32.totalorder %s2039_s23, 47  ;;  %p2043_p5 = scmp.ne.s32.totalorder %s3094_s22, 0 }
   0xf   : > { %s3101_s24 = scalar_select %p273_p3, %s3094_s22, 2 }
  0x10   : > { %s4095_s23 = smov (!%p262_p4, %s2039_s23), 47  ;;  %279 = sbr.rel (%p2043_p5) target bundleno = 280 (0x118), region = 48 }
  0x11   : > { %s275_s27 = scalar_lea.vmem %s4039_s5, %s3101_s24  ;;  %s2040_s28 = sshll.u32 %s4095_s23, 3  ;;  %v296_v0 = vld [vmem:[%s4035_s1] sm:$0xff] (!%p2043_p5)  ;;  %v297_v1 = vld [vmem:[%s4035_s1 + $0x8] sm:$0xff] (!%p2043_p5)  ;;  %v298_v2 = vld [vmem:[%s4035_s1 + $0x10] sm:$0xff] (!%p2043_p5)  ;;  %v3045_v40 = vmov (!%p2043_p5), -inf   ;;  %v3046_v41 = vmov (!%p2043_p5), 0.0  }
  0x12   : > { %s3110_s7 = scalar_lea.vmem %s4037_s3, %s2040_s28  ;;  %s3115_s10 = scalar_lea.vmem %s4038_s4, %s2040_s28  ;;  %v2707_v3 = vpack.c.bf16 (!%p2043_p5), %v297_v1, %v296_v0  ;;  %v299_v4 = vld [vmem:[%s4035_s1 + $0x18] sm:$0xff] (!%p2043_p5)  ;;  %v300_v6 = vld [vmem:[%s4035_s1 + $0x20] sm:$0xff] (!%p2043_p5)  ;;  %v301_v7 = vld [vmem:[%s4035_s1 + $0x28] sm:$0xff] (!%p2043_p5)  ;;  %480 = vst [vmem:[#allocation3] sm:$0x1] (!%p2043_p5), %v3045_v40 }
  0x13   : > { %v2711_v5 = vpack.c.bf16 (!%p2043_p5), %v299_v4, %v298_v2  ;;  %v2715_v8 = vpack.c.bf16 (!%p2043_p5), %v301_v7, %v300_v6  ;;  %v280_v9 = vld [vmem:[%s4034_s0] sm:$0xff] (!%p2043_p5)  ;;  %v302_v11 = vld [vmem:[%s4035_s1 + $0x30] sm:$0xff] (!%p2043_p5)  ;;  %v303_v12 = vld [vmem:[%s4035_s1 + $0x38] sm:$0xff] (!%p2043_p5)  ;;  %481 = vst [vmem:[#allocation4] sm:$0x1] (!%p2043_p5), %v3046_v41 }
  0x14   : > { %2708 = vmatprep.subr.bf16.mxu0 (!%p2043_p5), %v2707_v3  ;;  %2899 = vmatprep.subr.bf16.mxu1 (!%p2043_p5), %v2707_v3  ;;  %v288_v10 = vld [vmem:[%s4034_s0 + $0x40] sm:$0xff] (!%p2043_p5)  ;;  %v2719_v13 = vpack.c.bf16 (!%p2043_p5), %v303_v12, %v302_v11  ;;  %v305_v15 = vld [vmem:[%s4035_s1 + $0x48] sm:$0xff] (!%p2043_p5)  ;;  %v306_v17 = vld [vmem:[%s4035_s1 + $0x50] sm:$0xff] (!%p2043_p5)  ;;  %482 = vst [vmem:[#allocation5] sm:$0xff] (!%p2043_p5), %v3046_v41 }
  0x15   : > { %2710 = vmatpush3.bf16.msra.mxu0 (!%p2043_p5), %v2707_v3  ;;  %2907 = vmatpush3.bf16.msra.mxu1 (!%p2043_p5), %v2707_v3  ;;  %v304_v14 = vld [vmem:[%s4035_s1 + $0x40] sm:$0xff] (!%p2043_p5)  ;;  %v307_v18 = vld [vmem:[%s4035_s1 + $0x58] sm:$0xff] (!%p2043_p5)  ;;  %v309_v21 = vld [vmem:[%s4035_s1 + $0x68] sm:$0xff] (!%p2043_p5)  ;;  %483 = vst [vmem:[#allocation5 + $0x8] sm:$0xff] (!%p2043_p5), %v3046_v41 }
  0x16   : > { %2712 = vmatprep.subr.bf16.mxu0 (!%p2043_p5), %v2711_v5  ;;  %2900 = vmatprep.subr.bf16.mxu1 (!%p2043_p5), %v2711_v5  ;;  %v2723_v16 = vpack.c.bf16 (!%p2043_p5), %v305_v15, %v304_v14  ;;  %v2727_v19 = vpack.c.bf16 (!%p2043_p5), %v307_v18, %v306_v17  ;;  %v308_v20 = vld [vmem:[%s4035_s1 + $0x60] sm:$0xff] (!%p2043_p5)  ;;  %v310_v23 = vld [vmem:[%s4035_s1 + $0x70] sm:$0xff] (!%p2043_p5)  ;;  %v311_v24 = vld [vmem:[%s4035_s1 + $0x78] sm:$0xff] (!%p2043_p5)  ;;  %484 = vst [vmem:[#allocation5 + $0x10] sm:$0xff] (!%p2043_p5), %v3046_v41 }
  0x17   : > { %2403 = vmatprep.mubr.f32.mxu0 %v280_v9  ;;  %2415 = vmatprep.mubr.f32.mxu1 %v288_v10  ;;  %v2731_v22 = vpack.c.bf16 %v309_v21, %v308_v20  ;;  %v2735_v25 = vpack.c.bf16 %v311_v24, %v310_v23  ;;  %v281_v26 = vld [vmem:[%s4034_s0 + $0x8] sm:$0xff]  ;;  %v282_v28 = vld [vmem:[%s4034_s0 + $0x10] sm:$0xff]  ;;  %v283_v30 = vld [vmem:[%s4034_s0 + $0x18] sm:$0xff]  ;;  %485 = vst [vmem:[#allocation5 + $0x18] sm:$0xff] %v3046_v41 }
  0x18   : > { %v289_v27 = vld [vmem:[%s4034_s0 + $0x48] sm:$0xff]  ;;  %v290_v29 = vld [vmem:[%s4034_s0 + $0x50] sm:$0xff]  ;;  %v291_v31 = vld [vmem:[%s4034_s0 + $0x58] sm:$0xff]  ;;  %486 = vst [vmem:[#allocation5 + $0x20] sm:$0xff] %v3046_v41 }
  0x19   : > { %2714 = vmatpush3.bf16.msra.mxu0 %v2711_v5  ;;  %2908 = vmatpush3.bf16.msra.mxu1 %v2711_v5  ;;  %v284_v32 = vld [vmem:[%s4034_s0 + $0x20] sm:$0xff]  ;;  %v285_v34 = vld [vmem:[%s4034_s0 + $0x28] sm:$0xff]  ;;  %v286_v36 = vld [vmem:[%s4034_s0 + $0x30] sm:$0xff]  ;;  %487 = vst [vmem:[#allocation5 + $0x28] sm:$0xff] %v3046_v41 }
  0x1a   : > { %2716 = vmatprep.subr.bf16.mxu0 %v2715_v8  ;;  %2901 = vmatprep.subr.bf16.mxu1 %v2715_v8  ;;  %v292_v33 = vld [vmem:[%s4034_s0 + $0x60] sm:$0xff]  ;;  %v293_v35 = vld [vmem:[%s4034_s0 + $0x68] sm:$0xff]  ;;  %v294_v37 = vld [vmem:[%s4034_s0 + $0x70] sm:$0xff]  ;;  %488 = vst [vmem:[#allocation5 + $0x30] sm:$0xff] %v3046_v41 }
  0x1b   : > { %v287_v38 = vld [vmem:[%s4034_s0 + $0x38] sm:$0xff]  ;;  %489 = vst [vmem:[#allocation5 + $0x38] sm:$0xff] %v3046_v41  ;;  %490 = vst [vmem:[#allocation5 + $0x40] sm:$0xff] %v3046_v41  ;;  %v2044_v42 = vld [vmem:[%s4036_s2] ss:$0 sm:$0xff] }
  0x1c   : > { %v295_v39 = vld [vmem:[%s4034_s0 + $0x78] sm:$0xff]  ;;  %491 = vst [vmem:[#allocation5 + $0x48] sm:$0xff] %v3046_v41  ;;  %492 = vst [vmem:[#allocation5 + $0x50] sm:$0xff] %v3046_v41 }
  0x1d   : > { %2718 = vmatpush3.bf16.msra.mxu0 %v2715_v8  ;;  %2909 = vmatpush3.bf16.msra.mxu1 %v2715_v8  ;;  %493 = vst [vmem:[#allocation5 + $0x58] sm:$0xff] %v3046_v41  ;;  %494 = vst [vmem:[#allocation5 + $0x60] sm:$0xff] %v3046_v41 }
  0x1e   : > { %2720 = vmatprep.subr.bf16.mxu0 %v2719_v13  ;;  %2902 = vmatprep.subr.bf16.mxu1 %v2719_v13  ;;  %495 = vst [vmem:[#allocation5 + $0x68] sm:$0xff] %v3046_v41  ;;  %496 = vst [vmem:[#allocation5 + $0x70] sm:$0xff] %v3046_v41 }
  0x1f   : > { %497 = vst [vmem:[#allocation5 + $0x78] sm:$0xff] %v3046_v41 }
  0x21   : > { %2722 = vmatpush3.bf16.msra.mxu0 %v2719_v13  ;;  %2910 = vmatpush3.bf16.msra.mxu1 %v2719_v13 }
  0x22   : > { %2724 = vmatprep.subr.bf16.mxu0 %v2723_v16  ;;  %2903 = vmatprep.subr.bf16.mxu1 %v2723_v16 }
  0x25   : > { %2726 = vmatpush3.bf16.msra.mxu0 %v2723_v16  ;;  %2911 = vmatpush3.bf16.msra.mxu1 %v2723_v16 }
  0x26   : > { %2728 = vmatprep.subr.bf16.mxu0 %v2727_v19  ;;  %2904 = vmatprep.subr.bf16.mxu1 %v2727_v19 }
  0x29   : > { %2730 = vmatpush3.bf16.msra.mxu0 %v2727_v19  ;;  %2912 = vmatpush3.bf16.msra.mxu1 %v2727_v19 }
  0x2a   : > { %2732 = vmatprep.subr.bf16.mxu0 %v2731_v22  ;;  %2905 = vmatprep.subr.bf16.mxu1 %v2731_v22 }
  0x2d   : > { %2734 = vmatpush3.bf16.msra.mxu0 %v2731_v22  ;;  %2913 = vmatpush3.bf16.msra.mxu1 %v2731_v22 }
  0x2e   : > { %2736 = vmatprep.subr.bf16.mxu0 %v2735_v25  ;;  %2906 = vmatprep.subr.bf16.mxu1 %v2735_v25 }
  0x31   : > { %2738 = vmatpush3.bf16.msra.mxu0 %v2735_v25  ;;  %2914 = vmatpush3.bf16.msra.mxu1 %v2735_v25 }
  0x34   : > { %2404 = vmatmul.mubr.f32.vlgmr.msra.gmra.mrb[0].mxu0 %v281_v26  ;;  %2416 = vmatmul.mubr.f32.vlgmr.msra.gmra.mrb[0].mxu1 %v289_v27 }
  0x35   : > { %2406 = vmatprep.mubr.f32.mxu0 %v282_v28  ;;  %2418 = vmatprep.mubr.f32.mxu1 %v290_v29 }
  0x38   : > { %2407 = vmatmul.mubr.f32.gmra.mrb[2].mxu0 %v283_v30  ;;  %2419 = vmatmul.mubr.f32.gmra.mrb[2].mxu1 %v291_v31 }
  0x39   : > { %2409 = vmatprep.mubr.f32.mxu0 %v284_v32  ;;  %2421 = vmatprep.mubr.f32.mxu1 %v292_v33 }
  0x3c   : > { %2410 = vmatmul.mubr.f32.gmra.mrb[4].mxu0 %v285_v34  ;;  %2422 = vmatmul.mubr.f32.gmra.mrb[4].mxu1 %v293_v35 }
  0x3d   : > { %2412 = vmatprep.mubr.f32.mxu0 %v286_v36  ;;  %2424 = vmatprep.mubr.f32.mxu1 %v294_v37 }
  0x40   : > { %2413 = vmatmul.mubr.f32.gmra.mrb[6].mxu0 %v287_v38  ;;  %2425 = vmatmul.mubr.f32.gmra.mrb[6].mxu1 %v295_v39 }
 0x107   : > { %v2405_v43 = vpop.f32.mrb[0].mxu0  ;;  %v2417_v44 = vpop.f32.mrb[0].mxu1 }
 0x108   : > { %v391_v45 = vadd.f32 %v2405_v43, %v2044_v42  ;;  %v431_v46 = vadd.f32 %v2417_v44, %v2044_v42  ;;  %v385_v47 = vpop.f32.mrb[1].mxu0  ;;  %v425_v48 = vpop.f32.mrb[1].mxu1 }
 0x109   : > { %v386_v49 = vadd.f32 %v2044_v42, %v385_v47  ;;  %v426_v50 = vadd.f32 %v2044_v42, %v425_v48 }
 0x10a   : > { %465 = vst [vmem:[#allocation2 + $0x8] sm:$0xff] %v391_v45  ;;  %473 = vst [vmem:[#allocation2 + $0x48] sm:$0xff] %v431_v46 }
 0x10b   : > { %464 = vst [vmem:[#allocation2] sm:$0xff] %v386_v49  ;;  %472 = vst [vmem:[#allocation2 + $0x40] sm:$0xff] %v426_v50  ;;  %v2408_v51 = vpop.f32.mrb[2].mxu0  ;;  %v2420_v52 = vpop.f32.mrb[2].mxu1 }
 0x10c   : > { %v401_v53 = vadd.f32 %v2408_v51, %v2044_v42  ;;  %v441_v54 = vadd.f32 %v2420_v52, %v2044_v42  ;;  %v395_v55 = vpop.f32.mrb[3].mxu0  ;;  %v435_v56 = vpop.f32.mrb[3].mxu1 }
 0x10d   : > { %v396_v57 = vadd.f32 %v2044_v42, %v395_v55  ;;  %v436_v58 = vadd.f32 %v2044_v42, %v435_v56 }
 0x10e   : > { %467 = vst [vmem:[#allocation2 + $0x18] sm:$0xff] %v401_v53  ;;  %475 = vst [vmem:[#allocation2 + $0x58] sm:$0xff] %v441_v54 }
 0x10f   : > { %466 = vst [vmem:[#allocation2 + $0x10] sm:$0xff] %v396_v57  ;;  %474 = vst [vmem:[#allocation2 + $0x50] sm:$0xff] %v436_v58  ;;  %v2411_v59 = vpop.f32.mrb[4].mxu0  ;;  %v2423_v60 = vpop.f32.mrb[4].mxu1 }
 0x110   : > { %v411_v61 = vadd.f32 %v2411_v59, %v2044_v42  ;;  %v451_v62 = vadd.f32 %v2423_v60, %v2044_v42  ;;  %v405_v63 = vpop.f32.mrb[5].mxu0  ;;  %v445_v0 = vpop.f32.mrb[5].mxu1 }
 0x111   : > { %v406_v1 = vadd.f32 %v2044_v42, %v405_v63  ;;  %v446_v2 = vadd.f32 %v2044_v42, %v445_v0 }
 0x112   : > { %469 = vst [vmem:[#allocation2 + $0x28] sm:$0xff] %v411_v61  ;;  %477 = vst [vmem:[#allocation2 + $0x68] sm:$0xff] %v451_v62 }
 0x113   : > { %468 = vst [vmem:[#allocation2 + $0x20] sm:$0xff] %v406_v1  ;;  %476 = vst [vmem:[#allocation2 + $0x60] sm:$0xff] %v446_v2  ;;  %v2414_v3 = vpop.f32.mrb[6].mxu0  ;;  %v2426_v4 = vpop.f32.mrb[6].mxu1 }
 0x114   : > { %v421_v5 = vadd.f32 %v2414_v3, %v2044_v42  ;;  %v461_v6 = vadd.f32 %v2426_v4, %v2044_v42  ;;  %v415_v7 = vpop.f32.mrb[7].mxu0  ;;  %v455_v8 = vpop.f32.mrb[7].mxu1 }
 0x115   : > { %v416_v9 = vadd.f32 %v2044_v42, %v415_v7  ;;  %v456_v10 = vadd.f32 %v2044_v42, %v455_v8 }
 0x116   : > { %471 = vst [vmem:[#allocation2 + $0x38] sm:$0xff] %v421_v5  ;;  %479 = vst [vmem:[#allocation2 + $0x78] sm:$0xff] %v461_v6 }
 0x117   : > { %470 = vst [vmem:[#allocation2 + $0x30] sm:$0xff] %v416_v9  ;;  %478 = vst [vmem:[#allocation2 + $0x70] sm:$0xff] %v456_v10 }
 0x118 PF: > { %v516_v11 = vld [vmem:[%s3110_s7 + $0x10] sm:$0xff]  ;;  %v514_v12 = vld [vmem:[%s3110_s7] sm:$0xff]  ;;  %v3047_v13 = vmov 0   ;;  %v517_v14 = vld [vmem:[%s3110_s7 + $0x18] sm:$0xff]  ;;  %v4049_v4 = vlaneseq  ;;  %v4047_v8 = vmov 1.0   ;;  %p2158_p6 = scmp.ne.s32.totalorder %s3094_s22, 2 }
 0x119   : > { %2970 = vset.pattern.permute.xlu1 %v3047_v13  ;;  %2969 = vset.pattern.permute.xlu0 %v3047_v13  ;;  %v515_v15 = vld [vmem:[%s3110_s7 + $0x8] sm:$0xff]  ;;  %v518_v17 = vld [vmem:[%s3110_s7 + $0x20] sm:$0xff]  ;;  %v521_v18 = vld [vmem:[%s3110_s7 + $0x38] sm:$0xff] }
 0x11a   : > { %573 = vperm.xlu1 %2970, %v516_v11   ;;  %567 = vperm.xlu0 %2969, %v514_v12   ;;  %v519_v16 = vld [vmem:[%s3110_s7 + $0x28] sm:$0xff]  ;;  %v520_v19 = vld [vmem:[%s3110_s7 + $0x30] sm:$0xff]  ;;  %v498_v20 = vld [vmem:[#allocation2] sm:$0xff]  ;;  %v3283_v5 = vand.u32 127, %v4049_v4 }
 0x11b   : > { %v499_v21 = vld [vmem:[#allocation2 + $0x8] sm:$0xff]  ;;  %v500_v22 = vld [vmem:[#allocation2 + $0x10] sm:$0xff]  ;;  %v501_v23 = vld [vmem:[#allocation2 + $0x18] sm:$0xff] }
 0x11c   : > { %v3225_v24 = vpack.c.bf16 %v499_v21, %v498_v20  ;;  %v3227_v25 = vpack.c.bf16 %v501_v23, %v500_v22  ;;  %v502_v26 = vld [vmem:[#allocation2 + $0x20] sm:$0xff]  ;;  %v503_v27 = vld [vmem:[#allocation2 + $0x28] sm:$0xff]  ;;  %v525_v33 = vld [vmem:[%s3110_s7 + $0x58] sm:$0xff] }
 0x11d   : > { %v523_v28 = vld [vmem:[%s3110_s7 + $0x48] sm:$0xff]  ;;  %v522_v29 = vld [vmem:[%s3110_s7 + $0x40] sm:$0xff]  ;;  %v3234_v30 = vpack.c.bf16 %v503_v27, %v502_v26  ;;  %v505_v32 = vld [vmem:[#allocation2 + $0x38] sm:$0xff] }
 0x11e   : > { %576 = vperm.xlu1 %2970, %v517_v14   ;;  %570 = vperm.xlu0 %2969, %v515_v15   ;;  %v504_v31 = vld [vmem:[#allocation2 + $0x30] sm:$0xff]  ;;  %v506_v36 = vld [vmem:[#allocation2 + $0x40] sm:$0xff]  ;;  %v507_v37 = vld [vmem:[#allocation2 + $0x48] sm:$0xff] }
 0x11f   : > { %2740 = vmatprep.subr.bf16.mxu1 %v3225_v24  ;;  %v524_v34 = vld [vmem:[%s3110_s7 + $0x50] sm:$0xff]  ;;  %v3240_v35 = vpack.c.bf16 %v505_v32, %v504_v31  ;;  %v527_v38 = vld [vmem:[%s3110_s7 + $0x68] sm:$0xff]  ;;  %v526_v39 = vld [vmem:[%s3110_s7 + $0x60] sm:$0xff]  ;;  %v3246_v40 = vpack.c.bf16 %v507_v37, %v506_v36 }
 0x120   : > { %2742 = vmatpush3.bf16.msra.mxu1 %v3225_v24  ;;  %v508_v41 = vld [vmem:[#allocation2 + $0x50] sm:$0xff]  ;;  %v509_v42 = vld [vmem:[#allocation2 + $0x58] sm:$0xff]  ;;  %v510_v46 = vld [vmem:[#allocation2 + $0x60] sm:$0xff] }
 0x121   : > { %2744 = vmatprep.subr.bf16.mxu1 %v3227_v25  ;;  %v529_v43 = vld [vmem:[%s3110_s7 + $0x78] sm:$0xff]  ;;  %v528_v44 = vld [vmem:[%s3110_s7 + $0x70] sm:$0xff]  ;;  %v3252_v45 = vpack.c.bf16 %v509_v42, %v508_v41  ;;  %v511_v47 = vld [vmem:[#allocation2 + $0x68] sm:$0xff] }
 0x122   : > { %582 = vperm.xlu1 %2970, %v519_v16   ;;  %579 = vperm.xlu0 %2969, %v518_v17   ;;  %v531_v48 = vld [vmem:[%s3115_s10 + $0x8] sm:$0xff]  ;;  %v530_v49 = vld [vmem:[%s3115_s10] sm:$0xff]  ;;  %v3258_v50 = vpack.c.bf16 %v511_v47, %v510_v46  ;;  %v512_v51 = vld [vmem:[#allocation2 + $0x70] sm:$0xff] }
 0x123   : > { %v513_v52 = vld [vmem:[#allocation2 + $0x78] sm:$0xff]  ;;  %v532_v54 = vld [vmem:[%s3115_s10 + $0x10] sm:$0xff]  ;;  %v535_v56 = vld [vmem:[%s3115_s10 + $0x28] sm:$0xff] }
 0x124   : > { %2746 = vmatpush3.bf16.msra.mxu1 %v3227_v25  ;;  %v533_v53 = vld [vmem:[%s3115_s10 + $0x18] sm:$0xff]  ;;  %v3264_v55 = vpack.c.bf16 %v513_v52, %v512_v51  ;;  %v534_v57 = vld [vmem:[%s3115_s10 + $0x20] sm:$0xff]  ;;  %v536_v59 = vld [vmem:[%s3115_s10 + $0x30] sm:$0xff] }
 0x125   : > { %2748 = vmatprep.subr.bf16.mxu1 %v3234_v30  ;;  %v537_v58 = vld [vmem:[%s3115_s10 + $0x38] sm:$0xff]  ;;  %v539_v60 = vld [vmem:[%s3115_s10 + $0x48] sm:$0xff]  ;;  %v538_v61 = vld [vmem:[%s3115_s10 + $0x40] sm:$0xff] }
 0x126   : > { %588 = vperm.xlu1 %2970, %v521_v18   ;;  %585 = vperm.xlu0 %2969, %v520_v19   ;;  %v541_v62 = vld [vmem:[%s3115_s10 + $0x58] sm:$0xff]  ;;  %v540_v63 = vld [vmem:[%s3115_s10 + $0x50] sm:$0xff]  ;;  %v543_v0 = vld [vmem:[%s3115_s10 + $0x68] sm:$0xff] }
 0x127   : > { %v542_v1 = vld [vmem:[%s3115_s10 + $0x60] sm:$0xff]  ;;  %v545_v2 = vld [vmem:[%s3115_s10 + $0x78] sm:$0xff]  ;;  %v544_v3 = vld [vmem:[%s3115_s10 + $0x70] sm:$0xff] }
 0x128   : > { %2750 = vmatpush3.bf16.msra.mxu1 %v3234_v30 }
 0x129   : > { %2752 = vmatprep.subr.bf16.mxu1 %v3240_v35 }
 0x12a   : > { %594 = vperm.xlu1 %2970, %v523_v28   ;;  %591 = vperm.xlu0 %2969, %v522_v29  }
 0x12c   : > { %2754 = vmatpush3.bf16.msra.mxu1 %v3240_v35 }
 0x12d   : > { %2756 = vmatprep.subr.bf16.mxu1 %v3246_v40 }
 0x12e   : > { %600 = vperm.xlu1 %2970, %v525_v33   ;;  %597 = vperm.xlu0 %2969, %v524_v34  }
 0x130   : > { %2758 = vmatpush3.bf16.msra.mxu1 %v3246_v40 }
 0x131   : > { %2760 = vmatprep.subr.bf16.mxu1 %v3252_v45 }
 0x132   : > { %606 = vperm.xlu1 %2970, %v527_v38   ;;  %603 = vperm.xlu0 %2969, %v526_v39  }
 0x134   : > { %2762 = vmatpush3.bf16.msra.mxu1 %v3252_v45 }
 0x135   : > { %2764 = vmatprep.subr.bf16.mxu1 %v3258_v50 }
 0x136   : > { %612 = vperm.xlu1 %2970, %v529_v43   ;;  %609 = vperm.xlu0 %2969, %v528_v44  }
 0x138   : > { %2766 = vmatpush3.bf16.msra.mxu1 %v3258_v50 }
 0x139   : > { %2768 = vmatprep.subr.bf16.mxu1 %v3264_v55 }
 0x13a   : > { %666 = vperm.xlu1 %2970, %v531_v48   ;;  %663 = vperm.xlu0 %2969, %v530_v49  }
 0x13c   : > { %2770 = vmatpush3.bf16.msra.mxu1 %v3264_v55 }
 0x13d   : > { %2772 = vmatprep.subr.bf16.mxu1 %v3225_v24 }
 0x13e   : > { %672 = vperm.xlu1 %2970, %v533_v53   ;;  %669 = vperm.xlu0 %2969, %v532_v54  }
 0x142   : > { %678 = vperm.xlu1 %2970, %v535_v56   ;;  %675 = vperm.xlu0 %2969, %v534_v57  }
 0x146   : > { %684 = vperm.xlu1 %2970, %v537_v58   ;;  %681 = vperm.xlu0 %2969, %v536_v59  }
 0x14a   : > { %690 = vperm.xlu1 %2970, %v539_v60   ;;  %687 = vperm.xlu0 %2969, %v538_v61  }
 0x14e   : > { %696 = vperm.xlu1 %2970, %v541_v62   ;;  %693 = vperm.xlu0 %2969, %v540_v63  }
 0x152   : > { %702 = vperm.xlu1 %2970, %v543_v0   ;;  %699 = vperm.xlu0 %2969, %v542_v1  }
 0x156   : > { %708 = vperm.xlu1 %2970, %v545_v2   ;;  %705 = vperm.xlu0 %2969, %v544_v3  }
 0x199   : > { %v3285_v6 = vpop.permute.xlu1 %573  ;;  %v3287_v7 = vpop.permute.xlu0 %567 }
 0x19a   : > { %vm614_vm0 = vcmp.eq.s32.totalorder %v3283_v5, %v3287_v7  ;;  %vm616_vm1 = vcmp.eq.s32.totalorder %v3283_v5, %v3285_v6 }
 0x19b   : > { %2459 = vmatprep.mubr.msk.f32.mxu1 %vm614_vm0, %v4047_v8 }
 0x19d   : > { %v3297_v9 = vpop.permute.xlu1 %576  ;;  %v3299_v10 = vpop.permute.xlu0 %570 }
 0x19e   : > { %vm615_vm2 = vcmp.eq.s32.totalorder %v3283_v5, %v3299_v10  ;;  %vm617_vm3 = vcmp.eq.s32.totalorder %v3283_v5, %v3297_v9 }
 0x19f   : > { %2460 = vmatmul.mubr.msk.f32.vlgmr.msra.gmra.mrb[0].mxu1 %vm615_vm2, %v4047_v8 }
 0x1a0   : > { %2462 = vmatprep.mubr.msk.f32.mxu1 %vm616_vm1, %v4047_v8  ;;  %2774 = vmatpush3.bf16.msra.mxu1 %v3225_v24 }
 0x1a1   : > { %v3312_v11 = vpop.permute.xlu1 %582  ;;  %v3314_v12 = vpop.permute.xlu0 %579  ;;  %2776 = vmatprep.subr.bf16.mxu1 %v3227_v25 }
 0x1a2   : > { %vm618_vm4 = vcmp.eq.s32.totalorder %v3283_v5, %v3314_v12  ;;  %vm619_vm5 = vcmp.eq.s32.totalorder %v3283_v5, %v3312_v11 }
 0x1a3   : > { %2463 = vmatmul.mubr.msk.f32.gmra.mrb[2].mxu1 %vm617_vm3, %v4047_v8 }
 0x1a4   : > { %2465 = vmatprep.mubr.msk.f32.mxu1 %vm618_vm4, %v4047_v8  ;;  %2778 = vmatpush3.bf16.msra.mxu1 %v3227_v25 }
 0x1a5   : > { %v3330_v13 = vpop.permute.xlu1 %588  ;;  %v3332_v14 = vpop.permute.xlu0 %585  ;;  %2780 = vmatprep.subr.bf16.mxu1 %v3234_v30 }
 0x1a6   : > { %vm620_vm6 = vcmp.eq.s32.totalorder %v3283_v5, %v3332_v14  ;;  %vm621_vm7 = vcmp.eq.s32.totalorder %v3283_v5, %v3330_v13 }
 0x1a7   : > { %2466 = vmatmul.mubr.msk.f32.gmra.mrb[4].mxu1 %vm619_vm5, %v4047_v8 }
 0x1a8   : > { %2468 = vmatprep.mubr.msk.f32.mxu1 %vm620_vm6, %v4047_v8  ;;  %2782 = vmatpush3.bf16.msra.mxu1 %v3234_v30 }
 0x1a9   : > { %v3348_v15 = vpop.permute.xlu1 %594  ;;  %v3350_v16 = vpop.permute.xlu0 %591  ;;  %2784 = vmatprep.subr.bf16.mxu1 %v3240_v35 }
 0x1aa   : > { %vm622_vm8 = vcmp.eq.s32.totalorder %v3283_v5, %v3350_v16  ;;  %vm623_vm9 = vcmp.eq.s32.totalorder %v3283_v5, %v3348_v15 }
 0x1ab   : > { %2469 = vmatmul.mubr.msk.f32.gmra.mrb[6].mxu1 %vm621_vm7, %v4047_v8 }
 0x1ac   : > { %2471 = vmatprep.mubr.msk.f32.mxu1 %vm622_vm8, %v4047_v8  ;;  %2786 = vmatpush3.bf16.msra.mxu1 %v3240_v35 }
 0x1ad   : > { %v3366_v17 = vpop.permute.xlu1 %600  ;;  %v3368_v18 = vpop.permute.xlu0 %597  ;;  %2788 = vmatprep.subr.bf16.mxu1 %v3246_v40 }
 0x1ae   : > { %vm4046_vm10 = vcmp.eq.s32.totalorder %v3283_v5, %v3368_v18  ;;  %vm4044_vm11 = vcmp.eq.s32.totalorder %v3283_v5, %v3366_v17 }
 0x1af   : > { %2472 = vmatmul.mubr.msk.f32.gmra.mrb[8].mxu1 %vm623_vm9, %v4047_v8 }
 0x1b0   : > { %2474 = vmatprep.mubr.msk.f32.mxu1 %vm4046_vm10, %v4047_v8  ;;  %2790 = vmatpush3.bf16.msra.mxu1 %v3246_v40 }
 0x1b1   : > { %v3384_v19 = vpop.permute.xlu1 %606  ;;  %v3386_v20 = vpop.permute.xlu0 %603  ;;  %2792 = vmatprep.subr.bf16.mxu1 %v3252_v45 }
 0x1b2   : > { %vm4041_vm12 = vcmp.eq.s32.totalorder %v3283_v5, %v3386_v20  ;;  %vm4043_vm13 = vcmp.eq.s32.totalorder %v3283_v5, %v3384_v19 }
 0x1b3   : > { %2475 = vmatmul.mubr.msk.f32.gmra.mrb[10].mxu1 %vm4044_vm11, %v4047_v8 }
 0x1b4   : > { %2477 = vmatprep.mubr.msk.f32.mxu1 %vm4041_vm12, %v4047_v8  ;;  %2794 = vmatpush3.bf16.msra.mxu1 %v3252_v45 }
 0x1b5   : > { %v3402_v21 = vpop.permute.xlu1 %612  ;;  %v3404_v22 = vpop.permute.xlu0 %609  ;;  %2796 = vmatprep.subr.bf16.mxu1 %v3258_v50 }
 0x1b6   : > { %vm4042_vm14 = vcmp.eq.s32.totalorder %v3283_v5, %v3404_v22  ;;  %vm4045_vm15 = vcmp.eq.s32.totalorder %v3283_v5, %v3402_v21 }
 0x1b7   : > { %2478 = vmatmul.mubr.msk.f32.gmra.mrb[12].mxu1 %vm4043_vm13, %v4047_v8 }
 0x1b8   : > { %2480 = vmatprep.mubr.msk.f32.mxu1 %vm4042_vm14, %v4047_v8  ;;  %2798 = vmatpush3.bf16.msra.mxu1 %v3258_v50 }
 0x1b9   : > { %v667_v23 = vpop.permute.xlu1 %666  ;;  %v664_v24 = vpop.permute.xlu0 %663  ;;  %2800 = vmatprep.subr.bf16.mxu1 %v3264_v55 }
 0x1ba   : > { %vm710_vm12 = vcmp.eq.s32.totalorder %v3283_v5, %v664_v24  ;;  %vm711_vm14 = vcmp.eq.s32.totalorder %v3283_v5, %v667_v23 }
 0x1bb   : > { %2481 = vmatmul.mubr.msk.f32.gmra.mrb[14].mxu1 %vm4045_vm15, %v4047_v8 }
 0x1bc   : > { %2802 = vmatpush3.bf16.msra.mxu1 %v3264_v55  ;;  %2515 = vmatprep.mubr.msk.f32.mxu1 %vm710_vm12, %v4047_v8 }
 0x1bd   : > { %v673_v25 = vpop.permute.xlu1 %672  ;;  %v670_v26 = vpop.permute.xlu0 %669 }
 0x1be   : > { %vm712_vm13 = vcmp.eq.s32.totalorder %v3283_v5, %v670_v26  ;;  %vm713_vm11 = vcmp.eq.s32.totalorder %v3283_v5, %v673_v25 }
 0x1bf   : > { %2516 = vmatmul.mubr.msk.f32.vlgmr.msra.gmra.mrb[16].mxu1 %vm711_vm14, %v4047_v8 }
 0x1c0   : > { %2518 = vmatprep.mubr.msk.f32.mxu1 %vm712_vm13, %v4047_v8 }
 0x1c1   : > { %v679_v27 = vpop.permute.xlu1 %678  ;;  %v676_v28 = vpop.permute.xlu0 %675 }
 0x1c2   : > { %vm714_vm15 = vcmp.eq.s32.totalorder %v3283_v5, %v676_v28  ;;  %vm715_vm12 = vcmp.eq.s32.totalorder %v3283_v5, %v679_v27 }
 0x1c3   : > { %2519 = vmatmul.mubr.msk.f32.gmra.mrb[18].mxu1 %vm713_vm11, %v4047_v8 }
 0x1c4   : > { %2521 = vmatprep.mubr.msk.f32.mxu1 %vm714_vm15, %v4047_v8 }
 0x1c5   : > { %v685_v29 = vpop.permute.xlu1 %684  ;;  %v682_v30 = vpop.permute.xlu0 %681 }
 0x1c6   : > { %vm716_vm10 = vcmp.eq.s32.totalorder %v3283_v5, %v682_v30  ;;  %vm717_vm13 = vcmp.eq.s32.totalorder %v3283_v5, %v685_v29 }
 0x1c7   : > { %2522 = vmatmul.mubr.msk.f32.gmra.mrb[20].mxu1 %vm715_vm12, %v4047_v8 }
 0x1c8   : > { %2524 = vmatprep.mubr.msk.f32.mxu1 %vm716_vm10, %v4047_v8 }
 0x1c9   : > { %v691_v31 = vpop.permute.xlu1 %690  ;;  %v688_v32 = vpop.permute.xlu0 %687 }
 0x1ca   : > { %vm718_vm14 = vcmp.eq.s32.totalorder %v3283_v5, %v688_v32  ;;  %vm719_vm11 = vcmp.eq.s32.totalorder %v3283_v5, %v691_v31 }
 0x1cb   : > { %2525 = vmatmul.mubr.msk.f32.gmra.mrb[22].mxu1 %vm717_vm13, %v4047_v8 }
 0x1cc   : > { %2527 = vmatprep.mubr.msk.f32.mxu1 %vm718_vm14, %v4047_v8 }
 0x1cd   : > { %v697_v33 = vpop.permute.xlu1 %696  ;;  %v694_v34 = vpop.permute.xlu0 %693 }
 0x1ce   : > { %vm720_vm15 = vcmp.eq.s32.totalorder %v3283_v5, %v694_v34  ;;  %vm721_vm10 = vcmp.eq.s32.totalorder %v3283_v5, %v697_v33 }
 0x1cf   : > { %2528 = vmatmul.mubr.msk.f32.gmra.mrb[24].mxu1 %vm719_vm11, %v4047_v8 }
 0x1d0   : > { %2530 = vmatprep.mubr.msk.f32.mxu1 %vm720_vm15, %v4047_v8 }
 0x1d1   : > { %v703_v35 = vpop.permute.xlu1 %702  ;;  %v700_v36 = vpop.permute.xlu0 %699 }
 0x1d2   : > { %vm722_vm12 = vcmp.eq.s32.totalorder %v3283_v5, %v700_v36  ;;  %vm723_vm13 = vcmp.eq.s32.totalorder %v3283_v5, %v703_v35 }
 0x1d3   : > { %2531 = vmatmul.mubr.msk.f32.gmra.mrb[26].mxu1 %vm721_vm10, %v4047_v8 }
 0x1d4   : > { %2533 = vmatprep.mubr.msk.f32.mxu1 %vm722_vm12, %v4047_v8 }
 0x1d5   : > { %v706_v37 = vpop.permute.xlu0 %705  ;;  %v709_v38 = vpop.permute.xlu1 %708 }
 0x1d6   : > { %vm724_vm14 = vcmp.eq.s32.totalorder %v3283_v5, %v706_v37  ;;  %vm725_vm11 = vcmp.eq.s32.totalorder %v3283_v5, %v709_v38 }
 0x1d7   : > { %2534 = vmatmul.mubr.msk.f32.gmra.mrb[28].mxu1 %vm723_vm13, %v4047_v8 }
 0x1d8   : > { %2536 = vmatprep.mubr.msk.f32.mxu1 %vm724_vm14, %v4047_v8 }
 0x1db   : > { %2537 = vmatmul.mubr.msk.f32.gmra.mrb[30].mxu1 %vm725_vm11, %v4047_v8 }
 0x272   : > { %v2461_v39 = vpop.f32.mrb[0].mxu1 }
 0x273   : > { %v876_v40 = vpop.f32.mrb[1].mxu1 }
 0x276   : > { %v2464_v41 = vpop.f32.mrb[2].mxu1 }
 0x277   : > { %v886_v42 = vpop.f32.mrb[3].mxu1 }
 0x27a   : > { %v2467_v43 = vpop.f32.mrb[4].mxu1 }
 0x27b   : > { %v896_v44 = vpop.f32.mrb[5].mxu1 }
 0x27e   : > { %v2470_v45 = vpop.f32.mrb[6].mxu1 }
 0x27f   : > { %v906_v46 = vpop.f32.mrb[7].mxu1 }
 0x282   : > { %v2473_v47 = vpop.f32.mrb[8].mxu1 }
 0x283   : > { %v916_v48 = vpop.f32.mrb[9].mxu1 }
 0x286   : > { %v2476_v49 = vpop.f32.mrb[10].mxu1 }
 0x287   : > { %v926_v50 = vpop.f32.mrb[11].mxu1 }
 0x28a   : > { %v2479_v51 = vpop.f32.mrb[12].mxu1 }
 0x28b   : > { %v936_v52 = vpop.f32.mrb[13].mxu1 }
 0x28e   : > { %v2482_v53 = vpop.f32.mrb[14].mxu1 }
 0x28f   : > { %v946_v54 = vpop.f32.mrb[15].mxu1 }
 0x292   : > { %v3460_v55 = vpop.f32.mrb[16].mxu1 }
 0x293   : > { %v3462_v56 = vpop.f32.mrb[17].mxu1  ;;  %v1101_v57 = vmul.f32 %v3460_v55, %v2461_v39 }
 0x294   : > { %v1100_v58 = vmul.f32 %v3462_v56, %v876_v40 }
 0x295   : > { %1118 = vadd.xlane.f32.xlu1 %v1101_v57 }
 0x296   : > { %1116 = vadd.xlane.f32.xlu0 %v1100_v58  ;;  %v3466_v59 = vpop.f32.mrb[18].mxu1 }
 0x297   : > { %v3468_v60 = vpop.f32.mrb[19].mxu1  ;;  %v1103_v61 = vmul.f32 %v3466_v59, %v2464_v41 }
 0x298   : > { %v1102_v62 = vmul.f32 %v3468_v60, %v886_v42 }
 0x29a   : > { %1122 = vadd.xlane.f32.xlu0 %v1103_v61  ;;  %v3472_v63 = vpop.f32.mrb[20].mxu1 }
 0x29b   : > { %v3474_v0 = vpop.f32.mrb[21].mxu1  ;;  %v1105_v1 = vmul.f32 %v3472_v63, %v2467_v43 }
 0x29c   : > { %v1104_v2 = vmul.f32 %v3474_v0, %v896_v44 }
 0x29e   : > { %1120 = vadd.xlane.f32.xlu0 %v1102_v62  ;;  %1124 = vadd.xlane.f32.xlu1 %v1104_v2  ;;  %v3478_v3 = vpop.f32.mrb[22].mxu1 }
 0x29f   : > { %v3480_v23 = vpop.f32.mrb[23].mxu1  ;;  %v1107_v24 = vmul.f32 %v3478_v3, %v2470_v45 }
 0x2a0   : > { %4060 = vst [vmem:[#allocation9_spill] sm:$0xff] %v3480_v23  ;;  %v1106_v25 = vmul.f32 %v3480_v23, %v906_v46 }
 0x2a2   : > { %1126 = vadd.xlane.f32.xlu0 %v1105_v1  ;;  %1128 = vadd.xlane.f32.xlu1 %v1106_v25  ;;  %v3484_v26 = vpop.f32.mrb[24].mxu1 }
 0x2a3   : > { %4061 = vst [vmem:[#allocation10_spill] sm:$0xff] %v3484_v26  ;;  %v3486_v27 = vpop.f32.mrb[25].mxu1  ;;  %v1109_v28 = vmul.f32 %v3484_v26, %v2473_v47 }
 0x2a4   : > { %4062 = vst [vmem:[#allocation11_spill] sm:$0xff] %v3486_v27  ;;  %v1108_v29 = vmul.f32 %v3486_v27, %v916_v48 }
 0x2a6   : > { %1130 = vadd.xlane.f32.xlu0 %v1107_v24  ;;  %1132 = vadd.xlane.f32.xlu1 %v1108_v29  ;;  %v3490_v30 = vpop.f32.mrb[26].mxu1 }
 0x2a7   : > { %4063 = vst [vmem:[#allocation12_spill] sm:$0xff] %v3490_v30  ;;  %v3492_v31 = vpop.f32.mrb[27].mxu1  ;;  %v1111_v32 = vmul.f32 %v3490_v30, %v2476_v49 }
 0x2a8   : > { %4064 = vst [vmem:[#allocation13_spill] sm:$0xff] %v3492_v31  ;;  %v1110_v33 = vmul.f32 %v3492_v31, %v926_v50 }
 0x2aa   : > { %1134 = vadd.xlane.f32.xlu0 %v1109_v28  ;;  %1136 = vadd.xlane.f32.xlu1 %v1110_v33  ;;  %v3496_v34 = vpop.f32.mrb[28].mxu1 }
 0x2ab   : > { %4065 = vst [vmem:[#allocation14_spill] sm:$0xff] %v3496_v34  ;;  %v3498_v35 = vpop.f32.mrb[29].mxu1  ;;  %v1113_v36 = vmul.f32 %v3496_v34, %v2479_v51 }
 0x2ac   : > { %4066 = vst [vmem:[#allocation15_spill] sm:$0xff] %v3498_v35  ;;  %v1112_v37 = vmul.f32 %v3498_v35, %v936_v52 }
 0x2ae   : > { %1138 = vadd.xlane.f32.xlu0 %v1111_v32  ;;  %1140 = vadd.xlane.f32.xlu1 %v1112_v37  ;;  %v3502_v38 = vpop.f32.mrb[30].mxu1 }
 0x2af   : > { %4067 = vst [vmem:[#allocation16_spill] sm:$0xff] %v3502_v38  ;;  %v3504_v39 = vpop.f32.mrb[31].mxu1  ;;  %v1115_v40 = vmul.f32 %v3502_v38, %v2482_v53 }
 0x2b0   : > { %4068 = vst [vmem:[#allocation17_spill] sm:$0xff] %v3504_v39  ;;  %v1114_v41 = vmul.f32 %v3504_v39, %v946_v54 }
 0x2b2   : > { %1142 = vadd.xlane.f32.xlu0 %v1113_v36  ;;  %1144 = vadd.xlane.f32.xlu1 %v1114_v41 }
 0x2b6   : > { %1146 = vadd.xlane.f32.xlu0 %v1115_v40 }
 0x322   : > { %v1119_v43 = vpop.xlane.xlu1 %1118 }
 0x323   : > { %v1117_v42 = vpop.xlane.xlu0 %1116  ;;  %v1165_v49 = vmul.f32 0.2, %v1119_v43  ;;  %vm1149_vm15 = vcmp.gt.f32.partialorder %v1119_v43, 0.0 }
 0x324   : > { %v1164_v50 = vmul.f32 0.2, %v1117_v42  ;;  %vm1148_vm10 = vcmp.gt.f32.partialorder %v1117_v42, 0.0 }
 0x325   : > { %v3508_v58 = vsel %vm1149_vm15, %v1119_v43, %v1165_v49 }
 0x326   : > { %v3510_v61 = vsel %vm1148_vm10, %v1117_v42, %v1164_v50  ;;  %v1197_v29 = vsel %vm615_vm2, %v3508_v58, -inf }
 0x327   : > { %v1123_v44 = vpop.xlane.xlu0 %1122  ;;  %v1196_v32 = vsel %vm614_vm0, %v3510_v61, -inf }
 0x328   : > { %v1167_v54 = vmul.f32 0.2, %v1123_v44  ;;  %vm1151_vm14 = vcmp.gt.f32.partialorder %v1123_v44, 0.0 }
 0x32a   : > { %v3524_v33 = vsel %vm1151_vm14, %v1123_v44, %v1167_v54 }
 0x32b   : > { %v1121_v45 = vpop.xlane.xlu0 %1120  ;;  %v1125_v46 = vpop.xlane.xlu1 %1124  ;;  %v1199_v50 = vsel %vm617_vm3, %v3524_v33, -inf }
 0x32c   : > { %v1168_v51 = vmul.f32 0.2, %v1125_v46  ;;  %vm1152_vm12 = vcmp.gt.f32.partialorder %v1125_v46, 0.0  ;;  %v1166_v62 = vmul.f32 0.2, %v1121_v45  ;;  %vm1150_vm11 = vcmp.gt.f32.partialorder %v1121_v45, 0.0 }
 0x32e   : > { %v3512_v1 = vsel %vm1152_vm12, %v1125_v46, %v1168_v51  ;;  %v3526_v36 = vsel %vm1150_vm11, %v1121_v45, %v1166_v62 }
 0x32f   : > { %v1127_v47 = vpop.xlane.xlu0 %1126  ;;  %v1129_v48 = vpop.xlane.xlu1 %1128  ;;  %v1200_v37 = vsel %vm618_vm4, %v3512_v1, -inf  ;;  %v1198_v51 = vsel %vm616_vm1, %v3526_v36, -inf }
 0x330   : > { %v1169_v53 = vmul.f32 0.2, %v1127_v47  ;;  %vm1153_vm13 = vcmp.gt.f32.partialorder %v1127_v47, 0.0  ;;  %v1170_v28 = vmul.f32 0.2, %v1129_v48  ;;  %vm1154_vm15 = vcmp.gt.f32.partialorder %v1129_v48, 0.0 }
 0x332   : > { %v3514_v25 = vsel %vm1153_vm13, %v1127_v47, %v1169_v53  ;;  %v3536_v47 = vsel %vm1154_vm15, %v1129_v48, %v1170_v28  ;;  %v1212_v53 = vmax.f32 %v1196_v32, %v1200_v37 }
 0x333   : > { %v1131_v52 = vpop.xlane.xlu0 %1130  ;;  %v1133_v57 = vpop.xlane.xlu1 %1132  ;;  %v1201_v42 = vsel %vm619_vm5, %v3514_v25, -inf  ;;  %v1202_v8 = vsel %vm620_vm6, %v3536_v47, -inf }
 0x334   : > { %v1171_v40 = vmul.f32 0.2, %v1131_v52  ;;  %vm1155_vm10 = vcmp.gt.f32.partialorder %v1131_v52, 0.0  ;;  %v1172_v43 = vmul.f32 0.2, %v1133_v57  ;;  %vm1156_vm13 = vcmp.gt.f32.partialorder %v1133_v57, 0.0 }
 0x335   : > { %v1213_v28 = vmax.f32 %v1197_v29, %v1201_v42  ;;  %v1214_v32 = vmax.f32 %v1198_v51, %v1202_v8 }
 0x336   : > { %v3546_v54 = vsel %vm1155_vm10, %v1131_v52, %v1171_v40  ;;  %v3554_v4 = vsel %vm1156_vm13, %v1133_v57, %v1172_v43  ;;  %vm4069_vm13 = vcmp.eq.s32.totalorder %v3283_v5, %v3368_v18 }
 0x337   : > { %v1135_v2 = vpop.xlane.xlu0 %1134  ;;  %v1137_v24 = vpop.xlane.xlu1 %1136 }
 0x338   : > { %v1173_v41 = vmul.f32 0.2, %v1135_v2  ;;  %vm1157_vm12 = vcmp.gt.f32.partialorder %v1135_v2, 0.0  ;;  %v1174_v45 = vmul.f32 0.2, %v1137_v24  ;;  %vm1158_vm14 = vcmp.gt.f32.partialorder %v1137_v24, 0.0 }
 0x33a   : > { %v3548_v48 = vsel %vm1157_vm12, %v1135_v2, %v1173_v41  ;;  %v3556_v35 = vsel %vm1158_vm14, %v1137_v24, %v1174_v45  ;;  %v1203_v2 = vsel %vm621_vm7, %v3546_v54, -inf  ;;  %v1204_v24 = vsel %vm622_vm8, %v3554_v4, -inf }
 0x33b   : > { %v1139_v44 = vpop.xlane.xlu0 %1138  ;;  %v1141_v46 = vpop.xlane.xlu1 %1140  ;;  %v1205_v57 = vsel %vm623_vm9, %v3548_v48, -inf  ;;  %v1206_v41 = vsel %vm4069_vm13, %v3556_v35, -inf  ;;  %vm4070_vm14 = vcmp.eq.s32.totalorder %v3283_v5, %v3366_v17  ;;  %vm4074_vm13 = vcmp.eq.s32.totalorder %v3283_v5, %v3404_v22 }
 0x33c   : > { %v1175_v49 = vmul.f32 0.2, %v1139_v44  ;;  %vm1159_vm11 = vcmp.gt.f32.partialorder %v1139_v44, 0.0  ;;  %v1176_v62 = vmul.f32 0.2, %v1141_v46  ;;  %vm1160_vm15 = vcmp.gt.f32.partialorder %v1141_v46, 0.0 }
 0x33e   : > { %v3558_v34 = vsel %vm1159_vm11, %v1139_v44, %v1175_v49  ;;  %v3572_v37 = vsel %vm1160_vm15, %v1141_v46, %v1176_v62  ;;  %vm4071_vm11 = vcmp.eq.s32.totalorder %v3283_v5, %v3384_v19  ;;  %v1217_v46 = vmax.f32 %v1213_v28, %v1205_v57 }
 0x33f   : > { %v1143_v39 = vpop.xlane.xlu0 %1142  ;;  %v1145_v38 = vpop.xlane.xlu1 %1144  ;;  %v1207_v42 = vsel %vm4070_vm14, %v3558_v34, -inf  ;;  %v1216_v49 = vmax.f32 %v1212_v53, %v1204_v24 }
 0x340   : > { %vm1161_vm10 = vcmp.gt.f32.partialorder %v1143_v39, 0.0  ;;  %v1177_v52 = vmul.f32 0.2, %v1143_v39  ;;  %vm1162_vm12 = vcmp.gt.f32.partialorder %v1145_v38, 0.0  ;;  %v1178_v29 = vmul.f32 0.2, %v1145_v38 }
 0x342   : > { %v3574_v40 = vsel %vm1161_vm10, %v1143_v39, %v1177_v52  ;;  %v3588_v43 = vsel %vm1162_vm12, %v1145_v38, %v1178_v29  ;;  %v1215_v39 = vmax.f32 %v1199_v50, %v1203_v2  ;;  %vm4073_vm10 = vcmp.eq.s32.totalorder %v3283_v5, %v3386_v20 }
 0x343   : > { %v1209_v8 = vsel %vm4071_vm11, %v3574_v40, -inf  ;;  %4072 = vst [vmem:[#allocation18_spill] sm:$0xff] %v3588_v43  ;;  %v1147_v44 = vpop.xlane.xlu0 %1146  ;;  %v1208_v51 = vsel %vm4073_vm10, %v3572_v37, -inf  ;;  %v1210_v62 = vsel %vm4074_vm13, %v3588_v43, -inf  ;;  %v1218_v52 = vmax.f32 %v1214_v32, %v1206_v41 }
 0x344   : > { %vm1163_vm15 = vcmp.gt.f32.partialorder %v1147_v44, 0.0  ;;  %v1179_v45 = vmul.f32 0.2, %v1147_v44  ;;  %v1219_v31 = vmax.f32 %v1215_v39, %v1207_v42  ;;  %v1221_v38 = vmax.f32 %v1217_v46, %v1209_v8  ;;  %v1233_v8 = vld [vmem:[#allocation3] sm:$0x1] }
 0x345   : > { %vm4075_vm12 = vcmp.eq.s32.totalorder %v3283_v5, %v3402_v21  ;;  %v1220_v53 = vmax.f32 %v1216_v49, %v1208_v51  ;;  %v1222_v28 = vmax.f32 %v1218_v52, %v1210_v62  ;;  %v4076_v32 = vlaneseq }
 0x346   : > { %v3598_v29 = vsel %vm1163_vm15, %v1147_v44, %v1179_v45  ;;  %v3049_v51 = vmov 0.0   ;;  %v4083_v21 = vmov 1.0  }
 0x347   : > { %v1211_v50 = vsel %vm4075_vm12, %v3598_v29, -inf  ;;  %v1224_v57 = vmax.f32 %v1220_v53, %v1221_v38  ;;  %v3605_v41 = vshrl.u32 %v4076_v32, 7  ;;  %v3626_v62 = vsel %vm617_vm3, 1.0, %v3049_v51  ;;  %vm4080_vm3 = vmmov %vm4073_vm10 }
 0x348   : > { %v1223_v2 = vmax.f32 %v1219_v31, %v1211_v50  ;;  %v3631_v10 = vsel %vm616_vm1, 1.0, %v3049_v51  ;;  %v3638_v38 = vsel %vm619_vm5, 1.0, %v3049_v51  ;;  %v3643_v9 = vsel %vm618_vm4, 1.0, %v3049_v51  ;;  %vm4081_vm4 = vmmov %vm4075_vm12 }
 0x349   : > { %v3608_v39 = vsub.s32 0, %v3605_v41  ;;  %v3650_v53 = vsel %vm621_vm7, 1.0, %v3049_v51  ;;  %v3655_v11 = vsel %vm620_vm6, 1.0, %v3049_v51  ;;  %v3668_v13 = vsel %vm623_vm9, 1.0, %v3049_v51  ;;  %vm4082_vm5 = vmmov %vm4074_vm13 }
 0x34a   : > { %v1225_v24 = vmax.f32 %v1222_v28, %v1223_v2  ;;  %v3673_v14 = vsel %vm622_vm8, 1.0, %v3049_v51  ;;  %vm4078_vm1 = vcmp.eq.s32.totalorder %v3283_v5, %v3368_v18  ;;  %v3709_v19 = vsel %vm4082_vm5, 1.0, %v3049_v51 }
 0x34b   : > { %v3685_v15 = vsel %vm4078_vm1, 1.0, %v3049_v51 }
 0x34c   : > { %v1226_v30 = vmax.f32 %v1224_v57, %v1225_v24 }
 0x34e   : > { %v1227_v27 = vrot.slane %v1226_v30, 4 }
 0x350   : > { %v1228_v26 = vmax.f32 %v1226_v30, %v1227_v27 }
 0x352   : > { %v1229_v23 = vrot.slane %v1228_v26, 2 }
 0x354   : > { %v1230_v43 = vmax.f32 %v1228_v26, %v1229_v23  ;;  %v3614_v23 = vsel %vm615_vm2, 1.0, %v3049_v51  ;;  %v3619_v26 = vsel %vm614_vm0, 1.0, %v3049_v51  ;;  %vm4077_vm0 = vcmp.eq.s32.totalorder %v3283_v5, %v3366_v17  ;;  %vm4079_vm2 = vmmov %vm4071_vm11 }
 0x355   : > { %v3697_v17 = vsel %vm4080_vm3, 1.0, %v3049_v51 }
 0x356   : > { %v1231_v42 = vrot.slane %v1230_v43, 1 }
 0x358   : > { %v1232_v44 = vmax.f32 %v1230_v43, %v1231_v42  ;;  %v3680_v42 = vsel %vm4077_vm0, 1.0, %v3049_v51 }
 0x35a   : > { %v1234_v46 = vmax.f32 %v1233_v8, %v1232_v44  ;;  %v3692_v44 = vsel %vm4079_vm2, 1.0, %v3049_v51 }
 0x35c   : > { %vm1235_vm14 = vcmp.eq.f32.partialorder %v1234_v46, -inf  ;;  %1383 = vst [vmem:[#allocation3] sm:$0x1] %v1234_v46 }
 0x35d   : > { %v1236_v31 = vsel %vm1235_vm14, 0.0, %v1234_v46 }
 0x35e   : > { %v1237_v45 = vsub.f32 %v1233_v8, %v1236_v31  ;;  %v1244_v49 = vrot.slane %v1236_v31, %v3608_v39  ;;  %v3704_v31 = vsel %vm4081_vm4, 1.0, %v3049_v51 }
 0x360   : > { %v1238_v27 = vmul.f32 1.442695, %v1237_v45  ;;  %v1247_v30 = vmul.f32 %v3614_v23, %v1244_v49  ;;  %v1246_v43 = vmul.f32 %v3619_v26, %v1244_v49  ;;  %v1249_v7 = vmul.f32 %v3626_v62, %v1244_v49 }
 0x361   : > { %v1248_v52 = vmul.f32 %v3631_v10, %v1244_v49  ;;  %v1251_v6 = vmul.f32 %v3638_v38, %v1244_v49  ;;  %v1250_v50 = vmul.f32 %v3643_v9, %v1244_v49  ;;  %v1253_v12 = vmul.f32 %v3650_v53, %v1244_v49 }
 0x362   : > { %2971 = vpow2.f32 %v1238_v27  ;;  %1264 = vadd.xlane.f32.xlu0 %v1247_v30  ;;  %1262 = vadd.xlane.f32.xlu1 %v1246_v43  ;;  %v1252_v2 = vmul.f32 %v3655_v11, %v1244_v49  ;;  %v1255_v24 = vmul.f32 %v3668_v13, %v1244_v49  ;;  %v1254_v32 = vmul.f32 %v3673_v14, %v1244_v49  ;;  %v3718_v27 = vld [vmem:[%s275_s27] ss:$0 sm:$0xff] }
 0x363   : > { %v1257_v16 = vmul.f32 %v3680_v42, %v1244_v49  ;;  %v1256_v8 = vmul.f32 %v3685_v15, %v1244_v49  ;;  %v1259_v18 = vmul.f32 %v3692_v44, %v1244_v49  ;;  %v1258_v46 = vmul.f32 %v3697_v17, %v1244_v49 }
 0x364   : > { %v1261_v20 = vmul.f32 %v3704_v31, %v1244_v49  ;;  %v1260_v45 = vmul.f32 %v3709_v19, %v1244_v49  ;;  %vm762_vm6 = vcmp.eq.s32.totalorder %v3605_v41, %v3718_v27 }
 0x365   : > { %2571 = vmatprep.mubr.msk.f32.mxu0 %vm762_vm6, %v4083_v21  ;;  %vm1384_vm6 = vcmp.eq.s32.totalorder %v3605_v41, %v3283_v5 }
 0x366   : > { %1268 = vadd.xlane.f32.xlu0 %v1249_v7  ;;  %1266 = vadd.xlane.f32.xlu1 %v1248_v52 }
 0x36a   : > { %1272 = vadd.xlane.f32.xlu0 %v1251_v6  ;;  %1270 = vadd.xlane.f32.xlu1 %v1250_v50 }
 0x36c   : > { %v3657_v28 = vpop.eup %2971 }
 0x36d   : > { %v3663_v57 = vrot.slane %v3657_v28, %v3608_v39 }
 0x36e   : > { %1276 = vadd.xlane.f32.xlu0 %v1253_v12  ;;  %1274 = vadd.xlane.f32.xlu1 %v1252_v2 }
 0x372   : > { %1280 = vadd.xlane.f32.xlu0 %v1255_v24  ;;  %1278 = vadd.xlane.f32.xlu1 %v1254_v32 }
 0x376   : > { %1284 = vadd.xlane.f32.xlu0 %v1257_v16  ;;  %1282 = vadd.xlane.f32.xlu1 %v1256_v8 }
 0x37a   : > { %1288 = vadd.xlane.f32.xlu0 %v1259_v18  ;;  %1286 = vadd.xlane.f32.xlu1 %v1258_v46 }
 0x37e   : > { %1292 = vadd.xlane.f32.xlu0 %v1261_v20  ;;  %1290 = vadd.xlane.f32.xlu1 %v1260_v45 }
 0x3ef   : > { %v1265_v22 = vpop.xlane.xlu0 %1264  ;;  %v1263_v51 = vpop.xlane.xlu1 %1262 }
 0x3f0   : > { %v1295_v30 = vsub.f32 %v3508_v58, %v1265_v22  ;;  %v1294_v43 = vsub.f32 %v3510_v61, %v1263_v51 }
 0x3f2   : > { %v1312_v49 = vmul.f32 1.442695, %v1295_v30  ;;  %v1310_v7 = vmul.f32 1.442695, %v1294_v43 }
 0x3f3   : > { %v1269_v52 = vpop.xlane.xlu0 %1268  ;;  %v1267_v6 = vpop.xlane.xlu1 %1266 }
 0x3f4   : > { %2973 = vpow2.f32 %v1312_v49  ;;  %v1297_v50 = vsub.f32 %v3524_v33, %v1269_v52  ;;  %v1296_v12 = vsub.f32 %v3526_v36, %v1267_v6 }
 0x3f5   : > { %2975 = vpow2.f32 %v1310_v7 }
 0x3f6   : > { %v1316_v2 = vmul.f32 1.442695, %v1297_v50  ;;  %v1314_v24 = vmul.f32 1.442695, %v1296_v12 }
 0x3f7   : > { %v1273_v32 = vpop.xlane.xlu0 %1272  ;;  %v1271_v16 = vpop.xlane.xlu1 %1270 }
 0x3f8   : > { %2977 = vpow2.f32 %v1316_v2  ;;  %v1299_v8 = vsub.f32 %v3514_v25, %v1273_v32  ;;  %v1298_v58 = vsub.f32 %v3512_v1, %v1271_v16 }
 0x3f9   : > { %2979 = vpow2.f32 %v1314_v24 }
 0x3fa   : > { %v1320_v61 = vmul.f32 1.442695, %v1299_v8  ;;  %v1318_v18 = vmul.f32 1.442695, %v1298_v58 }
 0x3fb   : > { %v1277_v46 = vpop.xlane.xlu0 %1276  ;;  %v1275_v20 = vpop.xlane.xlu1 %1274 }
 0x3fc   : > { %2981 = vpow2.f32 %v1320_v61  ;;  %v1301_v33 = vsub.f32 %v3546_v54, %v1277_v46  ;;  %v1300_v36 = vsub.f32 %v3536_v47, %v1275_v20 }
 0x3fd   : > { %2983 = vpow2.f32 %v1318_v18 }
 0x3fe   : > { %v2974_v45 = vpop.eup %2973  ;;  %v1324_v22 = vmul.f32 1.442695, %v1301_v33  ;;  %v1322_v51 = vmul.f32 1.442695, %v1300_v36 }
 0x3ff   : > { %v2976_v30 = vpop.eup %2975  ;;  %v1343_v43 = vmul.f32 %v2974_v45, %v3614_v23  ;;  %v1281_v25 = vpop.xlane.xlu0 %1280  ;;  %v1423_v1 = vmul.f32 %v2974_v45, %v3460_v55 }
 0x400   : > { %v1279_v49 = vpop.xlane.xlu1 %1278  ;;  %v1342_v7 = vmul.f32 %v2976_v30, %v3619_v26  ;;  %2985 = vpow2.f32 %v1324_v22  ;;  %v1303_v52 = vsub.f32 %v3548_v48, %v1281_v25  ;;  %v1422_v47 = vmul.f32 %v2976_v30, %v3462_v56 }
 0x401   : > { %v1302_v54 = vsub.f32 %v3554_v4, %v1279_v49  ;;  %2987 = vpow2.f32 %v1322_v51 }
 0x402   : > { %v2978_v6 = vpop.eup %2977  ;;  %v1328_v50 = vmul.f32 1.442695, %v1303_v52  ;;  %v1358_v24 = vadd.f32 %v1343_v43, %v1342_v7  ;;  %v2803_v32 = vpack.c.bf16 %v1423_v1, %v1422_v47 }
 0x403   : > { %v1326_v12 = vmul.f32 1.442695, %v1302_v54  ;;  %v2980_v2 = vpop.eup %2979  ;;  %v1285_v23 = vpop.xlane.xlu0 %1284  ;;  %v1425_v55 = vmul.f32 %v2978_v6, %v3466_v59  ;;  %v1345_v58 = vmul.f32 %v2978_v6, %v3626_v62  ;;  %v4085_v54 = vld [vmem:[#allocation9_spill] sm:$0xff] }
 0x404   : > { %v1283_v16 = vpop.xlane.xlu1 %1282  ;;  %v1344_v26 = vmul.f32 %v2980_v2, %v3631_v10  ;;  %2989 = vpow2.f32 %v1328_v50  ;;  %v1305_v48 = vsub.f32 %v3558_v34, %v1285_v23  ;;  %2804 = vmatprep.subr.bf16.mxu0 %v2803_v32  ;;  %v1424_v56 = vmul.f32 %v2980_v2, %v3468_v60 }
 0x405   : > { %v1304_v4 = vsub.f32 %v3556_v35, %v1283_v16  ;;  %2991 = vpow2.f32 %v1326_v12  ;;  %2806 = vmatpush3.bf16.msra.mxu0 %v2803_v32  ;;  %v4086_v32 = vld [vmem:[#allocation10_spill] sm:$0xff] }
 0x406   : > { %v2982_v8 = vpop.eup %2981  ;;  %v1359_v61 = vadd.f32 %v1358_v24, %v1344_v26  ;;  %v1332_v18 = vmul.f32 1.442695, %v1305_v48  ;;  %v2807_v33 = vpack.c.bf16 %v1425_v55, %v1424_v56  ;;  %v4087_v55 = vld [vmem:[#allocation11_spill] sm:$0xff] }
 0x407   : > { %v1330_v46 = vmul.f32 1.442695, %v1304_v4  ;;  %v2984_v20 = vpop.eup %2983  ;;  %v1289_v59 = vpop.xlane.xlu0 %1288  ;;  %v1427_v36 = vmul.f32 %v2982_v8, %v3472_v63  ;;  %v1347_v51 = vmul.f32 %v2982_v8, %v3638_v38 }
 0x408   : > { %v1287_v10 = vpop.xlane.xlu1 %1286  ;;  %v1360_v34 = vadd.f32 %v1359_v61, %v1345_v58  ;;  %v1346_v35 = vmul.f32 %v2984_v20, %v3643_v9  ;;  %2993 = vpow2.f32 %v1332_v18  ;;  %v1307_v45 = vsub.f32 %v3574_v40, %v1289_v59  ;;  %2808 = vmatprep.subr.bf16.mxu0 %v2807_v33  ;;  %v4088_v58 = vld [vmem:[#allocation12_spill] sm:$0xff] }
 0x409   : > { %2995 = vpow2.f32 %v1330_v46  ;;  %v1306_v60 = vsub.f32 %v3572_v37, %v1287_v10  ;;  %v1426_v62 = vmul.f32 %v2984_v20, %v3474_v0  ;;  %2810 = vmatpush3.bf16.msra.mxu0 %v2807_v33  ;;  %v4084_v0 = vld [vmem:[#allocation18_spill] sm:$0xff]  ;;  %v4089_v20 = vld [vmem:[#allocation13_spill] sm:$0xff] }
 0x40a   : > { %v2986_v22 = vpop.eup %2985  ;;  %v1361_v30 = vadd.f32 %v1360_v34, %v1346_v35  ;;  %v1336_v43 = vmul.f32 1.442695, %v1307_v45 }
 0x40b   : > { %v2988_v25 = vpop.eup %2987  ;;  %v1334_v63 = vmul.f32 1.442695, %v1306_v60  ;;  %v1293_v49 = vpop.xlane.xlu0 %1292  ;;  %v2811_v1 = vpack.c.bf16 %v1427_v36, %v1426_v62  ;;  %v1429_v7 = vmul.f32 %v2986_v22, %v3478_v3  ;;  %v1349_v50 = vmul.f32 %v2986_v22, %v3650_v53  ;;  %v4091_v62 = vld [vmem:[#allocation15_spill] sm:$0xff] }
 0x40c   : > { %v1291_v9 = vpop.xlane.xlu1 %1290  ;;  %v1362_v40 = vadd.f32 %v1361_v30, %v1347_v51  ;;  %v1348_v52 = vmul.f32 %v2988_v25, %v3655_v11  ;;  %2997 = vpow2.f32 %v1336_v43  ;;  %v1309_v37 = vsub.f32 %v3598_v29, %v1293_v49 }
 0x40d   : > { %2999 = vpow2.f32 %v1334_v63  ;;  %2812 = vmatprep.subr.bf16.mxu0 %v2811_v1  ;;  %v1308_v38 = vsub.f32 %v4084_v0, %v1291_v9  ;;  %v1428_v47 = vmul.f32 %v2988_v25, %v4085_v54  ;;  %v4093_v9 = vld [vmem:[#allocation17_spill] sm:$0xff]  ;;  %v3775_v54 = vadd.s32 16, %v3605_v41 }
 0x40e   : > { %v2990_v6 = vpop.eup %2989  ;;  %v1363_v12 = vadd.f32 %v1362_v40, %v1348_v52  ;;  %v1340_v2 = vmul.f32 1.442695, %v1309_v37  ;;  %2814 = vmatpush3.bf16.msra.mxu0 %v2811_v1  ;;  %v1583_v40 = vld [vmem:[#allocation5] sm:$0xff] }
 0x40f   : > { %v2992_v24 = vpop.eup %2991  ;;  %v1338_v3 = vmul.f32 1.442695, %v1308_v38  ;;  %v2815_v23 = vpack.c.bf16 %v1429_v7, %v1428_v47  ;;  %v1431_v11 = vmul.f32 %v2990_v6, %v4086_v32  ;;  %v1351_v4 = vmul.f32 %v2990_v6, %v3668_v13  ;;  %v4090_v13 = vld [vmem:[#allocation14_spill] sm:$0xff]  ;;  %v1586_v6 = vld [vmem:[#allocation5 + $0x18] sm:$0xff] }
 0x410   : > { %v1364_v16 = vadd.f32 %v1363_v12, %v1349_v50  ;;  %v1350_v29 = vmul.f32 %v2992_v24, %v3673_v14  ;;  %3001 = vpow2.f32 %v1340_v2  ;;  %v1430_v26 = vmul.f32 %v2992_v24, %v4087_v55 }
 0x411   : > { %3003 = vpow2.f32 %v1338_v3  ;;  %2816 = vmatprep.subr.bf16.mxu0 %v2815_v23  ;;  %vm764_vm8 = vcmp.eq.s32.totalorder %v3775_v54, %v3718_v27  ;;  %v3785_v2 = vadd.s32 32, %v3605_v41  ;;  %v1587_v3 = vld [vmem:[#allocation5 + $0x20] sm:$0xff] }
 0x412   : > { %v2994_v48 = vpop.eup %2993  ;;  %v1365_v53 = vadd.f32 %v1364_v16, %v1350_v29  ;;  %2818 = vmatpush3.bf16.msra.mxu0 %v2815_v23  ;;  %v2819_v56 = vpack.c.bf16 %v1431_v11, %v1430_v26  ;;  %v1588_v23 = vld [vmem:[#allocation5 + $0x28] sm:$0xff]  ;;  %v3792_v11 = vadd.s32 40, %v3605_v41  ;;  %v3797_v29 = vadd.s32 48, %v3605_v41  ;;  %v1589_v26 = vld [vmem:[#allocation5 + $0x30] sm:$0xff] }
 0x413   : > { %v2996_v8 = vpop.eup %2995  ;;  %v1433_v61 = vmul.f32 %v2994_v48, %v4088_v58  ;;  %v1353_v33 = vmul.f32 %v2994_v48, %v3680_v42  ;;  %v4092_v42 = vld [vmem:[#allocation16_spill] sm:$0xff]  ;;  %vm766_vm11 = vcmp.eq.s32.totalorder %v3785_v2, %v3718_v27  ;;  %v2843_v16 = vpack.c.bf16 %v1588_v23, %v1587_v3 }
 0x414   : > { %v1366_v18 = vadd.f32 %v1365_v53, %v1351_v4  ;;  %v1352_v46 = vmul.f32 %v2996_v8, %v3685_v15  ;;  %2820 = vmatprep.subr.bf16.mxu0 %v2819_v56  ;;  %v1432_v14 = vmul.f32 %v2996_v8, %v4089_v20  ;;  %v1590_v48 = vld [vmem:[#allocation5 + $0x38] sm:$0xff]  ;;  %vm767_vm15 = vcmp.eq.s32.totalorder %v3792_v11, %v3718_v27  ;;  %v1592_v20 = vld [vmem:[#allocation5 + $0x48] sm:$0xff] }
 0x415   : > { %v1379_v4 = vld [vmem:[#allocation4] sm:$0x1]  ;;  %vm768_vm10 = vcmp.eq.s32.totalorder %v3797_v29, %v3718_v27  ;;  %v2847_v8 = vpack.c.bf16 %v1590_v48, %v1589_v26  ;;  %v3809_v58 = vadd.s32 64, %v3605_v41 }
 0x416   : > { %v2998_v59 = vpop.eup %2997  ;;  %v1367_v10 = vadd.f32 %v1366_v18, %v1352_v46  ;;  %2822 = vmatpush3.bf16.msra.mxu0 %v2819_v56  ;;  %v2823_v36 = vpack.c.bf16 %v1433_v61, %v1432_v14  ;;  %v3804_v56 = vadd.s32 56, %v3605_v41  ;;  %v1380_v18 = vmul.f32 %v3657_v28, %v1379_v4  ;;  %v1591_v46 = vld [vmem:[#allocation5 + $0x40] sm:$0xff] }
 0x417   : > { %v3000_v34 = vpop.eup %2999  ;;  %v1435_v35 = vmul.f32 %v2998_v59, %v4090_v13  ;;  %v1355_v15 = vmul.f32 %v2998_v59, %v3692_v44  ;;  %v3772_v44 = vadd.s32 8, %v3605_v41  ;;  %v3817_v59 = vadd.s32 72, %v3605_v41 }
 0x418   : > { %v1368_v45 = vadd.f32 %v1367_v10, %v1353_v33  ;;  %v1354_v60 = vmul.f32 %v3000_v34, %v3697_v17  ;;  %2824 = vmatprep.subr.bf16.mxu0 %v2823_v36  ;;  %v1434_v22 = vmul.f32 %v3000_v34, %v4091_v62  ;;  %v1584_v17 = vld [vmem:[#allocation5 + $0x8] sm:$0xff]  ;;  %vm769_vm13 = vcmp.eq.s32.totalorder %v3804_v56, %v3718_v27  ;;  %v1593_v10 = vld [vmem:[#allocation5 + $0x50] sm:$0xff] }
 0x419   : > { %v2835_v38 = vpack.c.bf16 %v1584_v17, %v1583_v40  ;;  %vm763_vm7 = vcmp.eq.s32.totalorder %v3772_v44, %v3718_v27  ;;  %vm770_vm12 = vcmp.eq.s32.totalorder %v3809_v58, %v3718_v27  ;;  %v2851_v33 = vpack.c.bf16 %v1592_v20, %v1591_v46 }
 0x41a   : > { %v3002_v51 = vpop.eup %3001  ;;  %v1369_v30 = vadd.f32 %v1368_v45, %v1354_v60  ;;  %2826 = vmatpush3.bf16.msra.mxu0 %v2823_v36  ;;  %v2827_v43 = vpack.c.bf16 %v1435_v35, %v1434_v22  ;;  %v3822_v28 = vadd.s32 80, %v3605_v41  ;;  %v1594_v36 = vld [vmem:[#allocation5 + $0x58] sm:$0xff]  ;;  %vm771_vm14 = vcmp.eq.s32.totalorder %v3817_v59, %v3718_v27  ;;  %v1595_v45 = vld [vmem:[#allocation5 + $0x60] sm:$0xff]  ;;  %v1596_v60 = vld [vmem:[#allocation5 + $0x68] sm:$0xff] }
 0x41b   : > { %v3004_v25 = vpop.eup %3003  ;;  %v1437_v63 = vmul.f32 %v3002_v51, %v4092_v42  ;;  %v1357_v52 = vmul.f32 %v3002_v51, %v3704_v31  ;;  %v3780_v31 = vadd.s32 24, %v3605_v41  ;;  %v3829_v34 = vadd.s32 88, %v3605_v41 }
 0x41c   : > { %v1370_v49 = vadd.f32 %v1369_v30, %v1355_v15  ;;  %v1356_v1 = vmul.f32 %v3004_v25, %v3709_v19  ;;  %2828 = vmatprep.subr.bf16.mxu0 %v2827_v43  ;;  %v1436_v7 = vmul.f32 %v3004_v25, %v4093_v9  ;;  %v1585_v19 = vld [vmem:[#allocation5 + $0x10] sm:$0xff]  ;;  %vm772_vm0 = vcmp.eq.s32.totalorder %v3822_v28, %v3718_v27  ;;  %v1598_v30 = vld [vmem:[#allocation5 + $0x78] sm:$0xff] }
 0x41d   : > { %v2839_v12 = vpack.c.bf16 %v1586_v6, %v1585_v19  ;;  %vm765_vm9 = vcmp.eq.s32.totalorder %v3780_v31, %v3718_v27  ;;  %v2855_v13 = vpack.c.bf16 %v1594_v36, %v1593_v10  ;;  %v3834_v35 = vadd.s32 96, %v3605_v41  ;;  %v1597_v15 = vld [vmem:[#allocation5 + $0x70] sm:$0xff] }
 0x41e   : > { %v1371_v37 = vadd.f32 %v1370_v49, %v1356_v1  ;;  %2830 = vmatpush3.bf16.msra.mxu0 %v2827_v43  ;;  %v2831_v0 = vpack.c.bf16 %v1437_v63, %v1436_v7  ;;  %vm773_vm1 = vcmp.eq.s32.totalorder %v3829_v34, %v3718_v27  ;;  %v3841_v62 = vadd.s32 104, %v3605_v41 }
 0x41f   : > { %vm774_vm2 = vcmp.eq.s32.totalorder %v3834_v35, %v3718_v27  ;;  %v2859_v22 = vpack.c.bf16 %v1596_v60, %v1595_v45  ;;  %v3846_v51 = vadd.s32 112, %v3605_v41  ;;  %v3853_v43 = vadd.s32 120, %v3605_v41 }
 0x420   : > { %v1372_v47 = vadd.f32 %v1371_v37, %v1357_v52  ;;  %2832 = vmatprep.subr.bf16.mxu0 %v2831_v0  ;;  %vm775_vm3 = vcmp.eq.s32.totalorder %v3841_v62, %v3718_v27  ;;  %v2863_v25 = vpack.c.bf16 %v1598_v30, %v1597_v15 }
 0x421   : > { %vm776_vm4 = vcmp.eq.s32.totalorder %v3846_v51, %v3718_v27  ;;  %vm777_vm5 = vcmp.eq.s32.totalorder %v3853_v43, %v3718_v27 }
 0x422   : > { %v1373_v50 = vrot.slane %v1372_v47, 4  ;;  %2834 = vmatpush3.bf16.msra.mxu0 %v2831_v0 }
 0x423   : > { %2836 = vmatprep.subr.bf16.mxu0 %v2835_v38 }
 0x424   : > { %v1374_v24 = vadd.f32 %v1373_v50, %v1372_v47 }
 0x425   : > { %2572 = vmatmul.mubr.msk.f32.vlgmr.msra.gmra.mrb[0].mxu0 %vm763_vm7, %v4083_v21  ;;  %vm1385_vm7 = vcmp.eq.s32.totalorder %v3772_v44, %v3283_v5 }
 0x426   : > { %v1375_v32 = vrot.slane %v1374_v24, 2  ;;  %2838 = vmatpush3.bf16.msra.mxu0 %v2835_v38  ;;  %2574 = vmatprep.mubr.msk.f32.mxu0 %vm764_vm8, %v4083_v21  ;;  %vm1386_vm8 = vcmp.eq.s32.totalorder %v3775_v54, %v3283_v5 }
 0x427   : > { %2840 = vmatprep.subr.bf16.mxu0 %v2839_v12 }
 0x428   : > { %v1376_v55 = vadd.f32 %v1375_v32, %v1374_v24 }
 0x429   : > { %2575 = vmatmul.mubr.msk.f32.gmra.mrb[2].mxu0 %vm765_vm9, %v4083_v21  ;;  %vm1387_vm9 = vcmp.eq.s32.totalorder %v3780_v31, %v3283_v5 }
 0x42a   : > { %v1377_v53 = vrot.slane %v1376_v55, 1  ;;  %2842 = vmatpush3.bf16.msra.mxu0 %v2839_v12  ;;  %2577 = vmatprep.mubr.msk.f32.mxu0 %vm766_vm11, %v4083_v21  ;;  %vm1388_vm11 = vcmp.eq.s32.totalorder %v3785_v2, %v3283_v5 }
 0x42b   : > { %2844 = vmatprep.subr.bf16.mxu0 %v2843_v16 }
 0x42c   : > { %v1378_v61 = vadd.f32 %v1377_v53, %v1376_v55 }
 0x42d   : > { %2578 = vmatmul.mubr.msk.f32.gmra.mrb[4].mxu0 %vm767_vm15, %v4083_v21  ;;  %vm1389_vm15 = vcmp.eq.s32.totalorder %v3792_v11, %v3283_v5 }
 0x42e   : > { %v1381_v14 = vadd.f32 %v1380_v18, %v1378_v61  ;;  %2846 = vmatpush3.bf16.msra.mxu0 %v2843_v16  ;;  %2580 = vmatprep.mubr.msk.f32.mxu0 %vm768_vm10, %v4083_v21  ;;  %vm1390_vm10 = vcmp.eq.s32.totalorder %v3797_v29, %v3283_v5 }
 0x42f   : > { %2848 = vmatprep.subr.bf16.mxu0 %v2847_v8 }
 0x430   : > { %1382 = vst [vmem:[#allocation4] sm:$0x1] %v1381_v14 }
 0x431   : > { %2581 = vmatmul.mubr.msk.f32.gmra.mrb[6].mxu0 %vm769_vm13, %v4083_v21  ;;  %vm1391_vm13 = vcmp.eq.s32.totalorder %v3804_v56, %v3283_v5 }
 0x432   : > { %2850 = vmatpush3.bf16.msra.mxu0 %v2847_v8  ;;  %2583 = vmatprep.mubr.msk.f32.mxu0 %vm770_vm12, %v4083_v21  ;;  %vm1392_vm12 = vcmp.eq.s32.totalorder %v3809_v58, %v3283_v5 }
 0x433   : > { %2852 = vmatprep.subr.bf16.mxu0 %v2851_v33 }
 0x435   : > { %2584 = vmatmul.mubr.msk.f32.gmra.mrb[8].mxu0 %vm771_vm14, %v4083_v21  ;;  %vm1393_vm14 = vcmp.eq.s32.totalorder %v3817_v59, %v3283_v5 }
 0x436   : > { %2854 = vmatpush3.bf16.msra.mxu0 %v2851_v33  ;;  %2586 = vmatprep.mubr.msk.f32.mxu0 %vm772_vm0, %v4083_v21  ;;  %vm1394_vm0 = vcmp.eq.s32.totalorder %v3822_v28, %v3283_v5 }
 0x437   : > { %2856 = vmatprep.subr.bf16.mxu0 %v2855_v13  ;;  %v1764_v55 = vld [vmem:[#allocation4] sm:$0x1] (!%p2158_p6) }
 0x438   : > { %v1765_v4 = vadd.f32 (!%p2158_p6), 1e-16, %v1764_v55 }
 0x439   : > { %2587 = vmatmul.mubr.msk.f32.gmra.mrb[10].mxu0 %vm773_vm1, %v4083_v21  ;;  %vm1395_vm1 = vcmp.eq.s32.totalorder %v3829_v34, %v3283_v5 }
 0x43a   : > { %2858 = vmatpush3.bf16.msra.mxu0 %v2855_v13  ;;  %2589 = vmatprep.mubr.msk.f32.mxu0 %vm774_vm2, %v4083_v21  ;;  %vm1396_vm2 = vcmp.eq.s32.totalorder %v3834_v35, %v3283_v5  ;;  %3005 = vrcp.f32 (!%p2158_p6), %v1765_v4 }
 0x43b   : > { %2860 = vmatprep.subr.bf16.mxu0 %v2859_v22 }
 0x43d   : > { %2590 = vmatmul.mubr.msk.f32.gmra.mrb[12].mxu0 %vm775_vm3, %v4083_v21  ;;  %vm1397_vm3 = vcmp.eq.s32.totalorder %v3841_v62, %v3283_v5 }
 0x43e   : > { %2862 = vmatpush3.bf16.msra.mxu0 %v2859_v22  ;;  %2592 = vmatprep.mubr.msk.f32.mxu0 %vm776_vm4, %v4083_v21  ;;  %vm1398_vm4 = vcmp.eq.s32.totalorder %v3846_v51, %v3283_v5 }
 0x43f   : > { %2864 = vmatprep.subr.bf16.mxu0 %v2863_v25 }
 0x441   : > { %2593 = vmatmul.mubr.msk.f32.gmra.mrb[14].mxu0 %vm777_vm5, %v4083_v21  ;;  %vm1399_vm5 = vcmp.eq.s32.totalorder %v3853_v43, %v3283_v5 }
 0x442   : > { %2866 = vmatpush3.bf16.msra.mxu0 %v2863_v25  ;;  %2627 = vmatprep.mubr.msk.f32.mxu0 %vm1384_vm6, %v3663_v57 }
 0x444   : > { %v3006_v33 = vpop.eup (!%p2158_p6), %3005 }
 0x445   : > { %2628 = vmatmul.mubr.msk.f32.vlgmr.msra.gmra.mrb[0].mxu0 %vm1385_vm7, %v3663_v57  ;;  %v1771_v13 = vrot.slane (!%p2158_p6), %v3006_v33, %v3608_v39 }
 0x446   : > { %2630 = vmatprep.mubr.msk.f32.mxu0 %vm1386_vm8, %v3663_v57 }
 0x447   : > { %2695 = vmatprep.mubr.msk.f32.mxu1 (!%p2158_p6), %vm1392_vm12, %v1771_v13 }
 0x449   : > { %2631 = vmatmul.mubr.msk.f32.gmra.mrb[2].mxu0 %vm1387_vm9, %v3663_v57 }
 0x44a   : > { %2633 = vmatprep.mubr.msk.f32.mxu0 %vm1388_vm11, %v3663_v57 }
 0x44d   : > { %2634 = vmatmul.mubr.msk.f32.gmra.mrb[4].mxu0 %vm1389_vm15, %v3663_v57 }
 0x44e   : > { %2636 = vmatprep.mubr.msk.f32.mxu0 %vm1390_vm10, %v3663_v57 }
 0x451   : > { %2637 = vmatmul.mubr.msk.f32.gmra.mrb[6].mxu0 %vm1391_vm13, %v3663_v57 }
 0x452   : > { %2639 = vmatprep.mubr.msk.f32.mxu0 %vm1392_vm12, %v3663_v57 }
 0x455   : > { %2640 = vmatmul.mubr.msk.f32.gmra.mrb[8].mxu0 %vm1393_vm14, %v3663_v57 }
 0x456   : > { %2642 = vmatprep.mubr.msk.f32.mxu0 %vm1394_vm0, %v3663_v57 }
 0x459   : > { %2643 = vmatmul.mubr.msk.f32.gmra.mrb[10].mxu0 %vm1395_vm1, %v3663_v57 }
 0x45a   : > { %2645 = vmatprep.mubr.msk.f32.mxu0 %vm1396_vm2, %v3663_v57 }
 0x45d   : > { %2646 = vmatmul.mubr.msk.f32.gmra.mrb[12].mxu0 %vm1397_vm3, %v3663_v57 }
 0x45e   : > { %2648 = vmatprep.mubr.msk.f32.mxu0 %vm1398_vm4, %v3663_v57 }
 0x461   : > { %2649 = vmatmul.mubr.msk.f32.gmra.mrb[14].mxu0 %vm1399_vm5, %v3663_v57 }
 0x462   : > { %2683 = vmatprep.mubr.msk.f32.mxu0 (!%p2158_p6), %vm1384_vm6, %v1771_v13 }
 0x518   : > { %v2629_v27 = vpop.f32.mrb[0].mxu0 }
 0x519   : > { %1745 = vst [vmem:[#allocation5 + $0x8] sm:$0xff] %v2629_v27  ;;  %v1665_v21 = vpop.f32.mrb[1].mxu0 }
 0x51a   : > { %1744 = vst [vmem:[#allocation5] sm:$0xff] %v1665_v21 }
 0x51c   : > { %v2632_v42 = vpop.f32.mrb[2].mxu0 }
 0x51d   : > { %1747 = vst [vmem:[#allocation5 + $0x18] sm:$0xff] %v2632_v42  ;;  %v1675_v63 = vpop.f32.mrb[3].mxu0 }
 0x51e   : > { %1746 = vst [vmem:[#allocation5 + $0x10] sm:$0xff] %v1675_v63 }
 0x520   : > { %v2635_v49 = vpop.f32.mrb[4].mxu0  ;;  %v1790_v6 = vld [vmem:[#allocation5 + $0x8] sm:$0xff] (!%p2158_p6) }
 0x521   : > { %1749 = vst [vmem:[#allocation5 + $0x28] sm:$0xff] %v2635_v49  ;;  %v1685_v1 = vpop.f32.mrb[5].mxu0  ;;  %v1789_v19 = vld [vmem:[#allocation5] sm:$0xff] (!%p2158_p6) }
 0x522   : > { %1748 = vst [vmem:[#allocation5 + $0x20] sm:$0xff] %v1685_v1  ;;  %v2867_v12 = vpack.c.bf16 (!%p2158_p6), %v1790_v6, %v1789_v19 }
 0x524   : > { %v2638_v9 = vpop.f32.mrb[6].mxu0  ;;  %v1792_v24 = vld [vmem:[#allocation5 + $0x18] sm:$0xff] (!%p2158_p6)  ;;  %2868 = vmatprep.subr.bf16.mxu0 (!%p2158_p6), %v2867_v12  ;;  %2931 = vmatprep.subr.bf16.mxu1 (!%p2158_p6), %v2867_v12 }
 0x525   : > { %1751 = vst [vmem:[#allocation5 + $0x38] sm:$0xff] %v2638_v9  ;;  %v1695_v7 = vpop.f32.mrb[7].mxu0  ;;  %v1791_v50 = vld [vmem:[#allocation5 + $0x10] sm:$0xff] (!%p2158_p6)  ;;  %2870 = vmatpush3.bf16.msra.mxu0 (!%p2158_p6), %v2867_v12  ;;  %2939 = vmatpush3.bf16.msra.mxu1 (!%p2158_p6), %v2867_v12 }
 0x526   : > { %1750 = vst [vmem:[#allocation5 + $0x30] sm:$0xff] %v1695_v7  ;;  %v2871_v3 = vpack.c.bf16 (!%p2158_p6), %v1792_v24, %v1791_v50 }
 0x528   : > { %v2641_v40 = vpop.f32.mrb[8].mxu0  ;;  %v1794_v32 = vld [vmem:[#allocation5 + $0x28] sm:$0xff] (!%p2158_p6)  ;;  %2872 = vmatprep.subr.bf16.mxu0 (!%p2158_p6), %v2871_v3  ;;  %2932 = vmatprep.subr.bf16.mxu1 (!%p2158_p6), %v2871_v3 }
 0x529   : > { %1753 = vst [vmem:[#allocation5 + $0x48] sm:$0xff] %v2641_v40  ;;  %v1705_v17 = vpop.f32.mrb[9].mxu0  ;;  %v1793_v23 = vld [vmem:[#allocation5 + $0x20] sm:$0xff] (!%p2158_p6)  ;;  %2874 = vmatpush3.bf16.msra.mxu0 (!%p2158_p6), %v2871_v3  ;;  %2940 = vmatpush3.bf16.msra.mxu1 (!%p2158_p6), %v2871_v3 }
 0x52a   : > { %1752 = vst [vmem:[#allocation5 + $0x40] sm:$0xff] %v1705_v17  ;;  %v2875_v16 = vpack.c.bf16 (!%p2158_p6), %v1794_v32, %v1793_v23 }
 0x52c   : > { %v2644_v57 = vpop.f32.mrb[10].mxu0  ;;  %v1796_v48 = vld [vmem:[#allocation5 + $0x38] sm:$0xff] (!%p2158_p6)  ;;  %2876 = vmatprep.subr.bf16.mxu0 (!%p2158_p6), %v2875_v16  ;;  %2933 = vmatprep.subr.bf16.mxu1 (!%p2158_p6), %v2875_v16 }
 0x52d   : > { %1755 = vst [vmem:[#allocation5 + $0x58] sm:$0xff] %v2644_v57  ;;  %v1715_v52 = vpop.f32.mrb[11].mxu0  ;;  %v1795_v26 = vld [vmem:[#allocation5 + $0x30] sm:$0xff] (!%p2158_p6)  ;;  %2878 = vmatpush3.bf16.msra.mxu0 (!%p2158_p6), %v2875_v16  ;;  %2941 = vmatpush3.bf16.msra.mxu1 (!%p2158_p6), %v2875_v16 }
 0x52e   : > { %1754 = vst [vmem:[#allocation5 + $0x50] sm:$0xff] %v1715_v52  ;;  %v2879_v53 = vpack.c.bf16 (!%p2158_p6), %v1796_v48, %v1795_v26 }
 0x530   : > { %v2647_v37 = vpop.f32.mrb[12].mxu0  ;;  %1763 = sbr.rel (%p2158_p6) target bundleno = 1574 (0x626), region = 52  ;;  %v1798_v61 = vld [vmem:[#allocation5 + $0x48] sm:$0xff] (!%p2158_p6)  ;;  %2880 = vmatprep.subr.bf16.mxu0 (!%p2158_p6), %v2879_v53  ;;  %2934 = vmatprep.subr.bf16.mxu1 (!%p2158_p6), %v2879_v53 }
 0x531   : > { %1757 = vst [vmem:[#allocation5 + $0x68] sm:$0xff] %v2647_v37  ;;  %v1725_v0 = vpop.f32.mrb[13].mxu0  ;;  %v1797_v8 = vld [vmem:[#allocation5 + $0x40] sm:$0xff] (!%p2158_p6)  ;;  %2882 = vmatpush3.bf16.msra.mxu0 (!%p2158_p6), %v2879_v53  ;;  %2942 = vmatpush3.bf16.msra.mxu1 (!%p2158_p6), %v2879_v53 }
 0x532   : > { %1756 = vst [vmem:[#allocation5 + $0x60] sm:$0xff] %v1725_v0  ;;  %v2883_v18 = vpack.c.bf16 (!%p2158_p6), %v1798_v61, %v1797_v8 }
 0x534   : > { %v2650_v38 = vpop.f32.mrb[14].mxu0  ;;  %v1800_v20 = vld [vmem:[#allocation5 + $0x58] sm:$0xff] (!%p2158_p6)  ;;  %2884 = vmatprep.subr.bf16.mxu0 (!%p2158_p6), %v2883_v18  ;;  %2935 = vmatprep.subr.bf16.mxu1 (!%p2158_p6), %v2883_v18 }
 0x535   : > { %1759 = vst [vmem:[#allocation5 + $0x78] sm:$0xff] %v2650_v38  ;;  %v1735_v47 = vpop.f32.mrb[15].mxu0  ;;  %v1799_v46 = vld [vmem:[#allocation5 + $0x50] sm:$0xff] (!%p2158_p6)  ;;  %2886 = vmatpush3.bf16.msra.mxu0 (!%p2158_p6), %v2883_v18  ;;  %2943 = vmatpush3.bf16.msra.mxu1 (!%p2158_p6), %v2883_v18 }
 0x536   : > { %1758 = vst [vmem:[#allocation5 + $0x70] sm:$0xff] %v1735_v47  ;;  %v2887_v14 = vpack.c.bf16 (!%p2158_p6), %v1800_v20, %v1799_v46 }
 0x538   : > { %v1802_v36 = vld [vmem:[#allocation5 + $0x68] sm:$0xff]  ;;  %2888 = vmatprep.subr.bf16.mxu0 %v2887_v14  ;;  %2936 = vmatprep.subr.bf16.mxu1 %v2887_v14 }
 0x539   : > { %v1801_v10 = vld [vmem:[#allocation5 + $0x60] sm:$0xff]  ;;  %2890 = vmatpush3.bf16.msra.mxu0 %v2887_v14  ;;  %2944 = vmatpush3.bf16.msra.mxu1 %v2887_v14 }
 0x53a   : > { %v2891_v45 = vpack.c.bf16 %v1802_v36, %v1801_v10 }
 0x53c   : > { %v1804_v22 = vld [vmem:[#allocation5 + $0x78] sm:$0xff]  ;;  %2892 = vmatprep.subr.bf16.mxu0 %v2891_v45  ;;  %2937 = vmatprep.subr.bf16.mxu1 %v2891_v45 }
 0x53d   : > { %v1803_v60 = vld [vmem:[#allocation5 + $0x70] sm:$0xff]  ;;  %2894 = vmatpush3.bf16.msra.mxu0 %v2891_v45  ;;  %2945 = vmatpush3.bf16.msra.mxu1 %v2891_v45 }
 0x53e   : > { %v2895_v39 = vpack.c.bf16 %v1804_v22, %v1803_v60 }
 0x540   : > { %2896 = vmatprep.subr.bf16.mxu0 %v2895_v39  ;;  %2938 = vmatprep.subr.bf16.mxu1 %v2895_v39 }
 0x541   : > { %2898 = vmatpush3.bf16.msra.mxu0 %v2895_v39  ;;  %2946 = vmatpush3.bf16.msra.mxu1 %v2895_v39 }
 0x544   : > { %2684 = vmatmul.mubr.msk.f32.vlgmr.msra.gmra.mrb[0].mxu0 %vm1385_vm7, %v1771_v13  ;;  %2696 = vmatmul.mubr.msk.f32.vlgmr.msra.gmra.mrb[0].mxu1 %vm1393_vm14, %v1771_v13 }
 0x545   : > { %2686 = vmatprep.mubr.msk.f32.mxu0 %vm1386_vm8, %v1771_v13  ;;  %2698 = vmatprep.mubr.msk.f32.mxu1 %vm1394_vm0, %v1771_v13 }
 0x548   : > { %2687 = vmatmul.mubr.msk.f32.gmra.mrb[2].mxu0 %vm1387_vm9, %v1771_v13  ;;  %2699 = vmatmul.mubr.msk.f32.gmra.mrb[2].mxu1 %vm1395_vm1, %v1771_v13 }
 0x549   : > { %2689 = vmatprep.mubr.msk.f32.mxu0 %vm1388_vm11, %v1771_v13  ;;  %2701 = vmatprep.mubr.msk.f32.mxu1 %vm1396_vm2, %v1771_v13 }
 0x54c   : > { %2690 = vmatmul.mubr.msk.f32.gmra.mrb[4].mxu0 %vm1389_vm15, %v1771_v13  ;;  %2702 = vmatmul.mubr.msk.f32.gmra.mrb[4].mxu1 %vm1397_vm3, %v1771_v13 }
 0x54d   : > { %2692 = vmatprep.mubr.msk.f32.mxu0 %vm1390_vm10, %v1771_v13  ;;  %2704 = vmatprep.mubr.msk.f32.mxu1 %vm1398_vm4, %v1771_v13 }
 0x550   : > { %2693 = vmatmul.mubr.msk.f32.gmra.mrb[6].mxu0 %vm1391_vm13, %v1771_v13  ;;  %2705 = vmatmul.mubr.msk.f32.gmra.mrb[6].mxu1 %vm1399_vm5, %v1771_v13 }
 0x617   : > { %v2685_v41 = vpop.f32.mrb[0].mxu0  ;;  %v2697_v44 = vpop.f32.mrb[0].mxu1 }
 0x618   : > { %1951 = vst [vmem:[#allocation6 + $0x8] sm:$0xff] %v2685_v41  ;;  %1959 = vst [vmem:[#allocation6 + $0x48] sm:$0xff] %v2697_v44  ;;  %v1871_v54 = vpop.f32.mrb[1].mxu0  ;;  %v1911_v31 = vpop.f32.mrb[1].mxu1 }
 0x619   : > { %1950 = vst [vmem:[#allocation6] sm:$0xff] %v1871_v54  ;;  %1958 = vst [vmem:[#allocation6 + $0x40] sm:$0xff] %v1911_v31 }
 0x61b   : > { %v2688_v2 = vpop.f32.mrb[2].mxu0  ;;  %v2700_v11 = vpop.f32.mrb[2].mxu1 }
 0x61c   : > { %1953 = vst [vmem:[#allocation6 + $0x18] sm:$0xff] %v2688_v2  ;;  %1961 = vst [vmem:[#allocation6 + $0x58] sm:$0xff] %v2700_v11  ;;  %v1881_v29 = vpop.f32.mrb[3].mxu0  ;;  %v1921_v58 = vpop.f32.mrb[3].mxu1 }
 0x61d   : > { %1952 = vst [vmem:[#allocation6 + $0x10] sm:$0xff] %v1881_v29  ;;  %1960 = vst [vmem:[#allocation6 + $0x50] sm:$0xff] %v1921_v58 }
 0x61f   : > { %v2691_v56 = vpop.f32.mrb[4].mxu0  ;;  %v2703_v59 = vpop.f32.mrb[4].mxu1 }
 0x620   : > { %1955 = vst [vmem:[#allocation6 + $0x28] sm:$0xff] %v2691_v56  ;;  %1963 = vst [vmem:[#allocation6 + $0x68] sm:$0xff] %v2703_v59  ;;  %v1891_v5 = vpop.f32.mrb[5].mxu0  ;;  %v1931_v28 = vpop.f32.mrb[5].mxu1 }
 0x621   : > { %1954 = vst [vmem:[#allocation6 + $0x20] sm:$0xff] %v1891_v5  ;;  %1962 = vst [vmem:[#allocation6 + $0x60] sm:$0xff] %v1931_v28 }
 0x623   : > { %v2694_v34 = vpop.f32.mrb[6].mxu0  ;;  %v2706_v35 = vpop.f32.mrb[6].mxu1 }
 0x624   : > { %1957 = vst [vmem:[#allocation6 + $0x38] sm:$0xff] %v2694_v34  ;;  %1965 = vst [vmem:[#allocation6 + $0x78] sm:$0xff] %v2706_v35  ;;  %v1901_v62 = vpop.f32.mrb[7].mxu0  ;;  %v1941_v51 = vpop.f32.mrb[7].mxu1 }
 0x625   : > { %1956 = vst [vmem:[#allocation6 + $0x30] sm:$0xff] %v1901_v62  ;;  %1964 = vst [vmem:[#allocation6 + $0x70] sm:$0xff] %v1941_v51 }
 0x626 PF: > { %p2951_p7 = scmp.eq.s32.totalorder %s3094_s22, 2  ;;  %s3050_s24 = smov [#allocation6]  }
 0x627   : > { %s1972_s27 = sshll.u32 %s3050_s24, 4  ;;  %s1973_s27 = int_to_ptr.vmem [resolvable:$true] %s1972_s27 }
 0x628   : > { %s3007_s26 = scalar_lea.vmem %s1973_s27, 2048  ;;  %p3014_p11 = scmp.lt.s32.totalorder %s1973_s27, %s1973_s27 }
 0x629   : > { %p3008_p8 = scmp.ne.s32.totalorder %s1973_s27, %s3007_s26  ;;  %p3015_p12 = scmp.lt.s32.totalorder %s3007_s26, %s3007_s26 }
 0x62b   : > { %p3009_p9 = pnand %p3008_p8, %p2951_p7  ;;  %p3016_p13 = por %p3015_p12, %p3014_p11 }
 0x62d   : > { %p3010_p10 = pneg %p3009_p9 }
 0x62f   : > { %p3017_p0 = pnand %p3016_p13, %p3010_p10 }
 0x631   : > { %3020 = shalt.err (!%p3017_p0)
}
 0x632   : > { %s3021_s30 = scalar_lea.hbm %s4040_s6, 2048 }
 0x633   : > { %p3022_p1 = scmp.ne.s32.totalorder %s4040_s6, %s3021_s30  ;;  %p3027_p4 = scmp.lt.u32.totalorder %s3021_s30, %s4040_s6 }
 0x635   : > { %p3023_p2 = pnand %p3022_p1, %p2951_p7 }
 0x637   : > { %p3024_p3 = pneg %p3023_p2 }
 0x639   : > { %p3029_p5 = pnand %p3027_p4, %p3024_p3 }
 0x63b   : > { %3032 = shalt.err (!%p3029_p5)
}
 0x63c   : > { %s3051_s13 = smov 128   ;;  %s3052_s14 = smov 8  }
 0x63d   : > { %2948 = dma.vmem_to_hbm [thread:$0]  (%p2951_p7), %s1973_s27, 2048, %s4040_s6, [#allocation7], %s3051_s13, %s3051_s13, %s3052_s14  }
 0x63e   : > { %3038 = dma.done.wait (%p2951_p7), [#allocation7], 2048  }
 0x63f   : > { %3040 = vsyncadd (%p2951_p7), [#allocation7], 4294965248 }
 0x640 PF: > { %s17_s21 = sadd.s32 1, %s3043_s21  }
 0x641   : > { %p14_p6 = scmp.ge.s32.totalorder %s17_s21, 5  }
 0x643   :  { %16 = sbr.rel (!%p14_p6) target bundleno = 1 (0x1), region = 85 }
 0x64a   :  { %1988 = vsyncpa [#allocation7], 1 }
 0x64b   :  { %1990 = vsyncpa [#allocation7 + $0x1], 1 }

</bundles_post_ra>
